<compile_context>
chip_gen: v5e
topology: v5e:2x2
jax: 0.10.0
libtpu: 0.0.40
codegen_flags: <defaults>
</compile_context>

<pallas_src>
import functools

import jax
import jax.numpy as jnp
import numpy as np
from jax.experimental import pallas as pl
from jax.experimental.pallas import tpu as pltpu


def _leaky_relu(x, slope=0.2):
    return jnp.where(x > 0, x, slope * x)


def _log_softmax(x):
    m = jnp.max(x, axis=-1, keepdims=True)
    return x - (m + jnp.log(jnp.sum(jnp.exp(x - m), axis=-1, keepdims=True)))


def _dis_clf_occ_kernel(x_ref, labels_ref,
                        w1_ref, w2_ref, w3_ref, w4_ref, bias_ref,
                        out_ref, *, batch, hid, out_dim, tile_b, compute_dtype):
    i = pl.program_id(0)

    # Biases live in one packed, lane-padded f32 slab: row r = bias of layer r+1.
    b1 = bias_ref[0:1, :hid]
    b2 = bias_ref[1:2, :out_dim]
    b3 = bias_ref[2:3, :out_dim]
    b4 = bias_ref[3:4, :out_dim]

    def dense(h, w_ref, b):
        # bf16 (or f32) MXU inputs, f32 accumulation, f32 bias add.
        return jnp.dot(h.astype(compute_dtype), w_ref[...],
                       preferred_element_type=jnp.float32) + b

    x = x_ref[...]                                              # (TB, D)
    h = _leaky_relu(dense(x, w1_ref, b1))                       # (TB, D/2) f32
    h = _leaky_relu(dense(h, w2_ref, b2))                       # (TB, O)  f32
    h = _leaky_relu(dense(h, w3_ref, b3))                       # (TB, O)  f32
    scores = dense(h, w4_ref, b4)                               # (TB, O)  f32

    # log_softmax(log_softmax(scores)) == log_softmax(scores): compute it once.
    logp = _log_softmax(scores)                                 # (TB, O)  f32

    tb, o = logp.shape
    labels = labels_ref[...]                                    # (TB, 1) int32
    cls_ids = jax.lax.broadcasted_iota(jnp.int32, (tb, o), 1)
    one_hot = (cls_ids == labels).astype(jnp.float32)           # (TB, O)
    per_row_nll = -jnp.sum(one_hot * logp, axis=-1, keepdims=True)   # (TB, 1)

    # Mask rows of the (possibly partial) last batch tile.
    row_ids = i * tile_b + jax.lax.broadcasted_iota(jnp.int32, (tb, 1), 0)
    per_row_nll = jnp.where(row_ids < batch, per_row_nll, 0.0)

    partial = jnp.sum(per_row_nll)
    # Lane-dense per-tile partial; the wrapper reads [tile, 0, 0].
    out_ref[...] = jnp.broadcast_to(partial, out_ref.shape).astype(out_ref.dtype)


def dis_clf_occ_loss(ents_emb, labels, params, *, tile_b=128,
                     compute_dtype=jnp.bfloat16):
    """Full DisClfOcc forward (return_loss=True) via a batch-gridded Pallas call."""
    B, D = ents_emb.shape
    hid = params["w1"].shape[1]
    out_dim = params["w4"].shape[1]
    num_tiles = pl.cdiv(B, tile_b)

    labels2d = labels.reshape(B, 1).astype(jnp.int32)
    x = ents_emb.astype(compute_dtype)
    w1 = params["w1"].astype(compute_dtype)
    w2 = params["w2"].astype(compute_dtype)
    w3 = params["w3"].astype(compute_dtype)
    w4 = params["w4"].astype(compute_dtype)

    # Pack the four biases into one (8, 128k) f32 slab -> a single pinned DMA.
    bias_lanes = 128 * max(1, -(-max(hid, out_dim) // 128))
    bias_slab = jnp.zeros((8, bias_lanes), jnp.float32)
    bias_slab = bias_slab.at[0, :hid].set(params["b1"].reshape(-1))
    bias_slab = bias_slab.at[1, :out_dim].set(params["b2"].reshape(-1))
    bias_slab = bias_slab.at[2, :out_dim].set(params["b3"].reshape(-1))
    bias_slab = bias_slab.at[3, :out_dim].set(params["b4"].reshape(-1))

    kernel = functools.partial(
        _dis_clf_occ_kernel, batch=B, hid=hid, out_dim=out_dim,
        tile_b=tile_b, compute_dtype=compute_dtype)

    partials = pl.pallas_call(
        kernel,
        out_shape=jax.ShapeDtypeStruct((num_tiles, 8, 128), jnp.float32),
        grid_spec=pltpu.PrefetchScalarGridSpec(
            num_scalar_prefetch=0,
            grid=(num_tiles,),
            in_specs=[
                pl.BlockSpec((tile_b, D), lambda i: (i, 0)),         # ents_emb tile
                pl.BlockSpec((tile_b, 1), lambda i: (i, 0)),         # labels tile
                pl.BlockSpec((D, hid), lambda i: (0, 0)),            # w1 (resident)
                pl.BlockSpec((hid, out_dim), lambda i: (0, 0)),      # w2 (resident)
                pl.BlockSpec((out_dim, out_dim), lambda i: (0, 0)),  # w3 (resident)
                pl.BlockSpec((out_dim, out_dim), lambda i: (0, 0)),  # w4 (resident)
                pl.BlockSpec((8, bias_lanes), lambda i: (0, 0)),     # packed biases
            ],
            out_specs=pl.BlockSpec((1, 8, 128), lambda i: (i, 0, 0)),
        ),
        compiler_params=pltpu.CompilerParams(
            dimension_semantics=("parallel",)),   # batch tiles are independent
    )(x, labels2d, w1, w2, w3, w4, bias_slab)

    # Tiny finalization in XLA: sum per-tile partials, divide by the true B.
    return jnp.sum(partials[:, 0, 0]) / jnp.float32(B)


def init_params(key, embed_dim, out_dim):
    """Deterministic synthetic parameters (Linear weights stored (in, out))."""
    hid = embed_dim // 2
    ks = jax.random.split(key, 8)

    def w(k, fan_in, fan_out):
        bound = 1.0 / np.sqrt(fan_in)
        return jax.random.uniform(k, (fan_in, fan_out), jnp.float32, -bound, bound)

    def b(k, fan_in, fan_out):
        bound = 1.0 / np.sqrt(fan_in)
        return jax.random.uniform(k, (1, fan_out), jnp.float32, -bound, bound)

    return {
        "w1": w(ks[0], embed_dim, hid),   "b1": b(ks[1], embed_dim, hid),
        "w2": w(ks[2], hid, out_dim),     "b2": b(ks[3], hid, out_dim),
        "w3": w(ks[4], out_dim, out_dim), "b3": b(ks[5], out_dim, out_dim),
        "w4": w(ks[6], out_dim, out_dim), "b4": b(ks[7], out_dim, out_dim),
    }


def _reference_loss(ents_emb, labels, params, compute_dtype=jnp.bfloat16):
    """Pure-JAX mirror of the PyTorch module (same bf16-in / f32-acc matmul policy)."""
    def dense(h, w, b):
        return jnp.dot(h.astype(compute_dtype), w.astype(compute_dtype),
                       preferred_element_type=jnp.float32) + b

    h = _leaky_relu(dense(ents_emb, params["w1"], params["b1"]))
    h = _leaky_relu(dense(h, params["w2"], params["b2"]))
    h = _leaky_relu(dense(h, params["w3"], params["b3"]))
    scores = dense(h, params["w4"], params["b4"])
    outputs = jax.nn.log_softmax(scores, axis=1)        # F.log_softmax
    logp = jax.nn.log_softmax(outputs, axis=1)          # CrossEntropyLoss's softmax
    return -jnp.mean(logp[jnp.arange(scores.shape[0]), labels])


if __name__ == "__main__":
    embed_dim = 32
    out_dim = 8
    batch = 200          # deliberately NOT a multiple of the 128-row tile
    tile_b = 128

    key = jax.random.PRNGKey(0)
    k_emb, k_lab, k_params = jax.random.split(key, 3)

    ents_emb = jax.random.normal(k_emb, (batch, embed_dim), jnp.float32)
    labels = jax.random.randint(k_lab, (batch,), 0, out_dim, jnp.int32)
    params = init_params(k_params, embed_dim, out_dim)

    loss = dis_clf_occ_loss(ents_emb, labels, params, tile_b=tile_b,
                            compute_dtype=jnp.bfloat16)
    jax.block_until_ready(loss)

    ref = _reference_loss(ents_emb, labels, params, compute_dtype=jnp.bfloat16)
    np.testing.assert_allclose(np.asarray(loss), np.asarray(ref),
                               rtol=2e-3, atol=2e-3)

    print("KERNEL_OK")
</pallas_src>

<mosaic_0001>
module attributes {stable_mosaic.version = 11 : i64} {
  func.func @_dis_clf_occ_kernel(%arg0: i32, %arg1: memref<128x32xbf16, #tpu.memory_space<vmem>>, %arg2: memref<128x1xi32, #tpu.memory_space<vmem>>, %arg3: memref<32x16xbf16, #tpu.memory_space<vmem>>, %arg4: memref<16x8xbf16, #tpu.memory_space<vmem>>, %arg5: memref<8x8xbf16, #tpu.memory_space<vmem>>, %arg6: memref<8x8xbf16, #tpu.memory_space<vmem>>, %arg7: memref<8x128xf32, #tpu.memory_space<vmem>>, %arg8: memref<1x8x128xf32, #tpu.memory_space<vmem>>) attributes {dimension_semantics = [#tpu.dimension_semantics<parallel>], iteration_bounds = array<i64: 2>, scalar_prefetch = 0 : i64, scratch_operands = 0 : i64, tpu.core_type = #tpu.core_type<tc>, window_params = [{transform_indices = @transform_0, window_bounds = array<i64: 128, 32>}, {transform_indices = @transform_1, window_bounds = array<i64: 128, 1>}, {pipeline_mode = #tpu.pipeline_mode<synchronous>, transform_indices = @transform_2, window_bounds = array<i64: 32, 16>}, {pipeline_mode = #tpu.pipeline_mode<synchronous>, transform_indices = @transform_3, window_bounds = array<i64: 16, 8>}, {pipeline_mode = #tpu.pipeline_mode<synchronous>, transform_indices = @transform_4, window_bounds = array<i64: 8, 8>}, {pipeline_mode = #tpu.pipeline_mode<synchronous>, transform_indices = @transform_5, window_bounds = array<i64: 8, 8>}, {pipeline_mode = #tpu.pipeline_mode<synchronous>, transform_indices = @transform_6, window_bounds = array<i64: 8, 128>}, {transform_indices = @transform_7, window_bounds = array<i64: 1, 8, 128>}]} {
    %c0 = arith.constant 0 : index
    %c0_0 = arith.constant 0 : index
    %0 = vector.load %arg7[%c0, %c0_0] : memref<8x128xf32, #tpu.memory_space<vmem>>, vector<1x16xf32>
    %c1 = arith.constant 1 : index
    %c0_1 = arith.constant 0 : index
    %1 = vector.load %arg7[%c1, %c0_1] : memref<8x128xf32, #tpu.memory_space<vmem>>, vector<1x8xf32>
    %c2 = arith.constant 2 : index
    %c0_2 = arith.constant 0 : index
    %2 = vector.load %arg7[%c2, %c0_2] : memref<8x128xf32, #tpu.memory_space<vmem>>, vector<1x8xf32>
    %c3 = arith.constant 3 : index
    %c0_3 = arith.constant 0 : index
    %3 = vector.load %arg7[%c3, %c0_3] : memref<8x128xf32, #tpu.memory_space<vmem>>, vector<1x8xf32>
    %c0_4 = arith.constant 0 : index
    %c0_5 = arith.constant 0 : index
    %4 = vector.load %arg1[%c0_4, %c0_5] : memref<128x32xbf16, #tpu.memory_space<vmem>>, vector<128x32xbf16>
    %c0_6 = arith.constant 0 : index
    %c0_7 = arith.constant 0 : index
    %5 = vector.load %arg3[%c0_6, %c0_7] : memref<32x16xbf16, #tpu.memory_space<vmem>>, vector<32x16xbf16>
    %cst = arith.constant dense<0.000000e+00> : vector<128x16xf32>
    %6 = tpu.matmul %4, %5, %cst {dimension_numbers = #tpu.dot_dimension_numbers<[1], [0], [0], [1], [0, 0, 1, 1], [], []>} : vector<128x32xbf16>, vector<32x16xbf16>, vector<128x16xf32> -> vector<128x16xf32>
    %7 = vector.broadcast %0 : vector<1x16xf32> to vector<128x16xf32>
    %8 = arith.addf %6, %7 : vector<128x16xf32>
    %cst_8 = arith.constant 0.000000e+00 : f32
    %9 = vector.broadcast %cst_8 : f32 to vector<128x16xf32>
    %10 = arith.cmpf ogt, %8, %9 : vector<128x16xf32>
    %cst_9 = arith.constant 2.000000e-01 : f32
    %11 = vector.broadcast %cst_9 : f32 to vector<128x16xf32>
    %12 = arith.mulf %11, %8 : vector<128x16xf32>
    %13 = arith.select %10, %8, %12 : vector<128x16xi1>, vector<128x16xf32>
    %14 = arith.truncf %13 : vector<128x16xf32> to vector<128x16xbf16>
    %c0_10 = arith.constant 0 : index
    %c0_11 = arith.constant 0 : index
    %15 = vector.load %arg4[%c0_10, %c0_11] : memref<16x8xbf16, #tpu.memory_space<vmem>>, vector<16x8xbf16>
    %cst_12 = arith.constant dense<0.000000e+00> : vector<128x8xf32>
    %16 = tpu.matmul %14, %15, %cst_12 {dimension_numbers = #tpu.dot_dimension_numbers<[1], [0], [0], [1], [0, 0, 1, 1], [], []>} : vector<128x16xbf16>, vector<16x8xbf16>, vector<128x8xf32> -> vector<128x8xf32>
    %17 = vector.broadcast %1 : vector<1x8xf32> to vector<128x8xf32>
    %18 = arith.addf %16, %17 : vector<128x8xf32>
    %cst_13 = arith.constant 0.000000e+00 : f32
    %19 = vector.broadcast %cst_13 : f32 to vector<128x8xf32>
    %20 = arith.cmpf ogt, %18, %19 : vector<128x8xf32>
    %cst_14 = arith.constant 2.000000e-01 : f32
    %21 = vector.broadcast %cst_14 : f32 to vector<128x8xf32>
    %22 = arith.mulf %21, %18 : vector<128x8xf32>
    %23 = arith.select %20, %18, %22 : vector<128x8xi1>, vector<128x8xf32>
    %24 = arith.truncf %23 : vector<128x8xf32> to vector<128x8xbf16>
    %c0_15 = arith.constant 0 : index
    %c0_16 = arith.constant 0 : index
    %25 = vector.load %arg5[%c0_15, %c0_16] : memref<8x8xbf16, #tpu.memory_space<vmem>>, vector<8x8xbf16>
    %cst_17 = arith.constant dense<0.000000e+00> : vector<128x8xf32>
    %26 = tpu.matmul %24, %25, %cst_17 {dimension_numbers = #tpu.dot_dimension_numbers<[1], [0], [0], [1], [0, 0, 1, 1], [], []>} : vector<128x8xbf16>, vector<8x8xbf16>, vector<128x8xf32> -> vector<128x8xf32>
    %27 = vector.broadcast %2 : vector<1x8xf32> to vector<128x8xf32>
    %28 = arith.addf %26, %27 : vector<128x8xf32>
    %cst_18 = arith.constant 0.000000e+00 : f32
    %29 = vector.broadcast %cst_18 : f32 to vector<128x8xf32>
    %30 = arith.cmpf ogt, %28, %29 : vector<128x8xf32>
    %cst_19 = arith.constant 2.000000e-01 : f32
    %31 = vector.broadcast %cst_19 : f32 to vector<128x8xf32>
    %32 = arith.mulf %31, %28 : vector<128x8xf32>
    %33 = arith.select %30, %28, %32 : vector<128x8xi1>, vector<128x8xf32>
    %34 = arith.truncf %33 : vector<128x8xf32> to vector<128x8xbf16>
    %c0_20 = arith.constant 0 : index
    %c0_21 = arith.constant 0 : index
    %35 = vector.load %arg6[%c0_20, %c0_21] : memref<8x8xbf16, #tpu.memory_space<vmem>>, vector<8x8xbf16>
    %cst_22 = arith.constant dense<0.000000e+00> : vector<128x8xf32>
    %36 = tpu.matmul %34, %35, %cst_22 {dimension_numbers = #tpu.dot_dimension_numbers<[1], [0], [0], [1], [0, 0, 1, 1], [], []>} : vector<128x8xbf16>, vector<8x8xbf16>, vector<128x8xf32> -> vector<128x8xf32>
    %37 = vector.broadcast %3 : vector<1x8xf32> to vector<128x8xf32>
    %38 = arith.addf %36, %37 : vector<128x8xf32>
    %cst_23 = arith.constant dense<0xFF800000> : vector<128xf32>
    %39 = vector.multi_reduction <maximumf>, %38, %cst_23 [1] : vector<128x8xf32> to vector<128xf32>
    %40 = vector.shape_cast %39 : vector<128xf32> to vector<128x1xf32>
    %41 = vector.broadcast %40 : vector<128x1xf32> to vector<128x8xf32>
    %42 = arith.subf %38, %41 : vector<128x8xf32>
    %43 = math.exp %42 : vector<128x8xf32>
    %cst_24 = arith.constant dense<0.000000e+00> : vector<128xf32>
    %44 = vector.multi_reduction <add>, %43, %cst_24 [1] : vector<128x8xf32> to vector<128xf32>
    %45 = vector.shape_cast %44 : vector<128xf32> to vector<128x1xf32>
    %46 = math.log %45 : vector<128x1xf32>
    %47 = arith.addf %40, %46 : vector<128x1xf32>
    %48 = vector.broadcast %47 : vector<128x1xf32> to vector<128x8xf32>
    %49 = arith.subf %38, %48 : vector<128x8xf32>
    %c0_25 = arith.constant 0 : index
    %c0_26 = arith.constant 0 : index
    %50 = vector.load %arg2[%c0_25, %c0_26] : memref<128x1xi32, #tpu.memory_space<vmem>>, vector<128x1xi32>
    %51 = tpu.iota {dimensions = array<i32: 1>} : vector<128x8xi32>
    %52 = vector.broadcast %50 : vector<128x1xi32> to vector<128x8xi32>
    %53 = arith.cmpi eq, %51, %52 : vector<128x8xi32>
    %54 = arith.extui %53 : vector<128x8xi1> to vector<128x8xi32>
    %55 = arith.sitofp %54 : vector<128x8xi32> to vector<128x8xf32>
    %56 = arith.mulf %55, %49 : vector<128x8xf32>
    %cst_27 = arith.constant dense<0.000000e+00> : vector<128xf32>
    %57 = vector.multi_reduction <add>, %56, %cst_27 [1] : vector<128x8xf32> to vector<128xf32>
    %58 = vector.shape_cast %57 : vector<128xf32> to vector<128x1xf32>
    %cst_28 = arith.constant 0.000000e+00 : f32
    %59 = vector.broadcast %cst_28 : f32 to vector<128x1xf32>
    %60 = arith.subf %59, %58 : vector<128x1xf32>
    %c128_i32 = arith.constant 128 : i32
    %61 = arith.muli %arg0, %c128_i32 : i32
    %62 = tpu.iota {dimensions = array<i32: 0>} : vector<128x1xi32>
    %63 = vector.broadcast %61 : i32 to vector<128x1xi32>
    %64 = arith.addi %63, %62 : vector<128x1xi32>
    %c200_i32 = arith.constant 200 : i32
    %65 = vector.broadcast %c200_i32 : i32 to vector<128x1xi32>
    %66 = arith.cmpi slt, %64, %65 : vector<128x1xi32>
    %cst_29 = arith.constant 0.000000e+00 : f32
    %67 = vector.broadcast %cst_29 : f32 to vector<128x1xf32>
    %68 = arith.select %66, %60, %67 : vector<128x1xi1>, vector<128x1xf32>
    %69 = vector.shape_cast %68 : vector<128x1xf32> to vector<1x128x1xf32>
    %cst_30 = arith.constant dense<0.000000e+00> : vector<1xf32>
    %70 = vector.multi_reduction <add>, %69, %cst_30 [1, 2] : vector<1x128x1xf32> to vector<1xf32>
    %71 = vector.shape_cast %70 : vector<1xf32> to vector<1x1x1xf32>
    %72 = vector.extract %71[0, 0, 0] : f32 from vector<1x1x1xf32>
    %73 = vector.broadcast %72 : f32 to vector<1x8x128xf32>
    %c0_31 = arith.constant 0 : index
    %c0_32 = arith.constant 0 : index
    %c0_33 = arith.constant 0 : index
    %74 = vector.load %arg8[%c0_31, %c0_32, %c0_33] : memref<1x8x128xf32, #tpu.memory_space<vmem>>, vector<1x8x128xf32>
    tpu.vector_store %arg8[%c0_31, %c0_32, %c0_33], %73 {strides = array<i32>} : memref<1x8x128xf32, #tpu.memory_space<vmem>>, vector<1x8x128xf32>,
    return
  }
  func.func @transform_0(%arg0: i32) -> (i32, i32) {
    %c0_i32 = arith.constant 0 : i32
    %c0_i32_0 = arith.constant 0 : i32
    return %arg0, %c0_i32 : i32, i32
  }
  func.func @transform_1(%arg0: i32) -> (i32, i32) {
    %c0_i32 = arith.constant 0 : i32
    %c0_i32_0 = arith.constant 0 : i32
    return %arg0, %c0_i32 : i32, i32
  }
  func.func @transform_2(%arg0: i32) -> (i32, i32) {
    %c0_i32 = arith.constant 0 : i32
    %c0_i32_0 = arith.constant 0 : i32
    %c0_i32_1 = arith.constant 0 : i32
    return %c0_i32, %c0_i32_0 : i32, i32
  }
  func.func @transform_3(%arg0: i32) -> (i32, i32) {
    %c0_i32 = arith.constant 0 : i32
    %c0_i32_0 = arith.constant 0 : i32
    %c0_i32_1 = arith.constant 0 : i32
    return %c0_i32, %c0_i32_0 : i32, i32
  }
  func.func @transform_4(%arg0: i32) -> (i32, i32) {
    %c0_i32 = arith.constant 0 : i32
    %c0_i32_0 = arith.constant 0 : i32
    %c0_i32_1 = arith.constant 0 : i32
    return %c0_i32, %c0_i32_0 : i32, i32
  }
  func.func @transform_5(%arg0: i32) -> (i32, i32) {
    %c0_i32 = arith.constant 0 : i32
    %c0_i32_0 = arith.constant 0 : i32
    %c0_i32_1 = arith.constant 0 : i32
    return %c0_i32, %c0_i32_0 : i32, i32
  }
  func.func @transform_6(%arg0: i32) -> (i32, i32) {
    %c0_i32 = arith.constant 0 : i32
    %c0_i32_0 = arith.constant 0 : i32
    %c0_i32_1 = arith.constant 0 : i32
    return %c0_i32, %c0_i32_0 : i32, i32
  }
  func.func @transform_7(%arg0: i32) -> (i32, i32, i32) {
    %c0_i32 = arith.constant 0 : i32
    %c0_i32_0 = arith.constant 0 : i32
    %c0_i32_1 = arith.constant 0 : i32
    return %arg0, %c0_i32, %c0_i32_0 : i32, i32, i32
  }
}

</mosaic_0001>

<bundles_post_ra>
// kernel: tpu_custom_call.1
= control target key start
LH: loop header
LB: loop body
LE: loop exit
PB: predicated region body
PF: predicated region fallthrough
CT: control target
= control target key end

     0   :  { %12 = vsyncpa [#allocation3], 0  ;;  %s2394_s0 = inlined_call_operand.vmem [shape: bf16[200,32], index: 0, kind: input, shape index: {}]   ;;  %s2395_s1 = inlined_call_operand.vmem [shape: s32[200,1], index: 1, kind: input, shape index: {}]   ;;  %s2396_s2 = inlined_call_operand.vmem [shape: bf16[32,16], index: 2, kind: input, shape index: {}]   ;;  %s2397_s3 = inlined_call_operand.vmem [shape: bf16[16,8], index: 3, kind: input, shape index: {}]   ;;  %s2398_s4 = inlined_call_operand.vmem [shape: bf16[8,8], index: 4, kind: input, shape index: {}]   ;;  %s2399_s5 = inlined_call_operand.vmem [shape: bf16[8,8], index: 5, kind: input, shape index: {}]   ;;  %s2400_s6 = inlined_call_operand.vmem [shape: f32[8,128], index: 6, kind: input, shape index: {}]   ;;  %s2401_s7 = inlined_call_operand.hbm [shape: f32[2,8,128], index: 7, kind: output, shape index: {}]  }
   0x1   :  { %14 = vsyncpa [#allocation3 + $0x1], 0  ;;  %s1838_s24 = smov 0   ;;  %s1840_s25 = smov 0  }
   0x2   :  { %s1842_s26 = smov 0   ;;  %s1844_s27 = smov 0  }
   0x3 LB: > { %s1859_s28 = sadd.s32 4294967295, %s1794_s27   ;;  %s1501_s29 = sadd.s32 4294967294, %s1794_s27   ;;  %s1794_s27 = sphi %s1844_s27, %s2407_s27   ;;  %s1790_s26 = sphi %s1842_s26, %s2406_s26   ;;  %s1786_s25 = sphi %s1840_s25, %s2405_s25   ;;  %s1782_s24 = sphi %s1838_s24, %s2404_s24  }
   0x4   : > { %s1863_s30 = sadd.s32 1, %s1794_s27   ;;  %s184_s8 = sadd.s32 1, %s1790_s26 }
   0x5   : > { %s181_s9 = ssub.s32 %s1794_s27, %s1863_s30  ;;  %p194_p0 = scmp.ne.s32.totalorder %s1790_s26, %s1786_s25 }
   0x6   : > { %p182_p1 = scmp.eq.s32.totalorder %s181_s9, 0  ;;  %p195_p2 = scmp.eq.s32.totalorder %s1859_s28, 1 }
   0x7   : > { %p200_p3 = scmp.ne.s32.totalorder %s1786_s25, %s1782_s24  ;;  %p201_p4 = scmp.eq.s32.totalorder %s1501_s29, 1 }
   0x8   : > { %s1874_s10 = scalar_select %p182_p1, %s1790_s26, %s184_s8  }
   0x9   : > { %p1876_p5 = por %p195_p2, %p194_p0  ;;  %p1880_p6 = por %p201_p4, %p200_p3 }
   0xa   : > { %p1504_p7 = scmp.ge.s32.totalorder %s1794_s27, 1  ;;  %p268_p8 = scmp.lt.s32.totalorder %s1794_s27, 3 }
   0xc   : > { %p269_p9 = pnand %p1504_p7, %p268_p8 }
   0xd   : > { %s1506_s15 = sshll.u32 (!%p269_p9), %s1859_s28, 4  ;;  %s1602_s9 = sshll.u32 (!%p269_p9), %s1859_s28, 7 }
   0xe   : > { %272 = sbr.rel (%p269_p9) target bundleno = 1293 (0x50d), region = 48  ;;  %p318_p10 = scmp.lt.s32.totalorder (!%p269_p9), %s1506_s15, 24 }
   0xf   : > { %s310_s13 = sand.u32 (!%p269_p9), 1, %s1786_s25   ;;  %s1604_s16 = sshll.u32 (!%p269_p9), %s1859_s28, 3 }
  0x10   : > { %s1505_s14 = sshll.u32 (!%p269_p9), %s310_s13, 3  ;;  %s1425_s19 = scalar_lea.hbm (!%p269_p9), %s2401_s7, %s1604_s16 }
  0x11   : > { %s312_s20 = scalar_lea.vmem (!%p269_p9), [#allocation2], %s1505_s14  ;;  %s1429_s22 = sshll.u32 (!%p269_p9), %s1425_s19, 4  ;;  %s1430_s22 = int_to_ptr.hbm [resolvable:$true] %s1429_s22 }
  0x12   : > { %s1752_s16 = scalar_lea.hbm (!%p269_p9), %s2401_s7, 16 }
  0x13   : > { %v1616_v0 = vld [vmem:[%s2396_s2 + $0x8] sm:$0xff]  ;;  %v1615_v1 = vld [vmem:[%s2396_s2] sm:$0xff]  ;;  %s2409_s15 = smov (!%p318_p10, %s1506_s15), 24  ;;  %vm419_vm0 = vcmask 261120   ;;  %vm558_vm3 = vcmask 130048  }
  0x14   : > { %450 = vmatpush.bf16.msra.mxu0 %v1616_v0  ;;  %s1507_s18 = sshll.u32 %s2409_s15, 2  ;;  %v1617_v9 = vld [vmem:[%s2397_s3] sm:$0xff] }
  0x15   : > { %s321_s21 = scalar_lea.vmem %s2394_s0, %s1507_s18  ;;  %590 = vmatpush.bf16.msra.mxu1 %v1617_v9  ;;  %v1913_v12 = vld [vmem:[%s2400_s6] ss:$0 sm:$0xff] }
  0x16   : > { %v1607_v2 = vld [vmem:[%s321_s21] sm:$0xff]  ;;  %v1608_v3 = vld [vmem:[%s321_s21 + $0x8] sm:$0xff]  ;;  %v1609_v4 = vld [vmem:[%s321_s21 + $0x10] sm:$0xff] }
  0x17   : > { %v1610_v5 = vld [vmem:[%s321_s21 + $0x18] sm:$0xff]  ;;  %v1611_v6 = vld [vmem:[%s321_s21 + $0x20] sm:$0xff]  ;;  %v1612_v7 = vld [vmem:[%s321_s21 + $0x28] sm:$0xff] }
  0x18   : > { %451 = vmatpush.bf16.msra.mxu0 %v1615_v1  ;;  %v1613_v8 = vld [vmem:[%s321_s21 + $0x30] sm:$0xff]  ;;  %v1614_v10 = vld [vmem:[%s321_s21 + $0x38] sm:$0xff]  ;;  %s1509_s21 = sshll.u32 %s2409_s15, 3  ;;  %s1746_s15 = sshra.s32 %s1430_s22, 4  ;;  %s1747_s15 = int_to_ptr.hbm [resolvable:$true] %s1746_s15 }
  0x19   : > { %s1995_s29 = scalar_lea.vmem %s2395_s1, %s1509_s21  ;;  %s1427_s21 = sshll.u32 %s312_s20, 4  ;;  %s1428_s21 = int_to_ptr.vmem [resolvable:$true] %s1427_s21 }
  0x1a   : > { %s1748_s8 = scalar_lea.hbm %s1747_s15, 8  ;;  %p1753_p0 = scmp.lt.s32.totalorder %s1747_s15, %s2401_s7 }
  0x1b   : > { %1550 = vmatmul.msk.bf16.vlgmr.msra.gmra.mxu0 %vm419_vm0, %v1607_v2  ;;  %p1749_p11 = scmp.ne.s32.totalorder %s1747_s15, %s1748_s8  ;;  %p1754_p1 = scmp.lt.s32.totalorder %s1752_s16, %s1748_s8 }
  0x1d   : > { %p1750_p12 = pnand %p1749_p11, %p1876_p5  ;;  %p1755_p2 = por %p1754_p1, %p1753_p0 }
  0x1f   : > { %p1751_p13 = pneg %p1750_p12 }
  0x21   : > { %p1756_p3 = pnand %p1755_p2, %p1751_p13 }
  0x2b   : > { %1551 = vmatmul.msk.bf16.gmra.mxu0 %vm419_vm0, %v1608_v3 }
  0x3b   : > { %1552 = vmatmul.msk.bf16.gmra.mxu0 %vm419_vm0, %v1609_v4 }
  0x4b   : > { %1553 = vmatmul.msk.bf16.gmra.mxu0 %vm419_vm0, %v1610_v5 }
  0x5b   : > { %1554 = vmatmul.msk.bf16.gmra.mxu0 %vm419_vm0, %v1611_v6 }
  0x6b   : > { %1555 = vmatmul.msk.bf16.gmra.mxu0 %vm419_vm0, %v1612_v7 }
  0x7b   : > { %1556 = vmatmul.msk.bf16.gmra.mxu0 %vm419_vm0, %v1613_v8 }
  0x8b   : > { %1557 = vmatmul.msk.bf16.gmra.mxu0 %vm419_vm0, %v1614_v10  ;;  %vm715_vm0 = vcmask 1043456  }
  0x98   : > { %v453_v11 = vpop.f32.mrf.mxu0 }
  0x99   : > { %v454_v13 = vadd.f32 %v1913_v12, %v453_v11 }
  0x9b   : > { %v509_v15 = vmul.f32 0.2, %v454_v13  ;;  %vm493_vm1 = vcmp.gt.f32.partialorder %v454_v13, 0.0 }
  0x9d   : > { %v525_v18 = vsel %vm493_vm1, %v454_v13, %v509_v15  ;;  %v688_v15 = vld [vmem:[%s2398_s4] sm:$0xf] }
  0xa0   : > { %v455_v14 = vpop.f32.mrf.mxu0 }
  0xa1   : > { %v456_v16 = vadd.f32 %v1913_v12, %v455_v14 }
  0xa3   : > { %vm494_vm2 = vcmp.gt.f32.partialorder %v456_v16, 0.0  ;;  %v510_v17 = vmul.f32 0.2, %v456_v16 }
  0xa5   : > { %v526_v19 = vsel %vm494_vm2, %v456_v16, %v510_v17 }
  0xa6   : > { %v541_v20 = vpack.c.bf16 %v526_v19, %v525_v18  ;;  %v717_v18 = vsel %vm715_vm0, %v688_v15, 0 }
  0xa7   : > { %726 = vmatpush.bf16.msra.mxu2 %v717_v18 }
  0xa8   : > { %v458_v21 = vpop.f32.mrf.mxu0  ;;  %1562 = vmatmul.msk.bf16.vlgmr.msra.gmra.mxu1 %vm558_vm3, %v541_v20 }
  0xa9   : > { %v459_v22 = vadd.f32 %v1913_v12, %v458_v21 }
  0xab   : > { %v511_v24 = vmul.f32 0.2, %v459_v22  ;;  %vm495_vm4 = vcmp.gt.f32.partialorder %v459_v22, 0.0 }
  0xad   : > { %v527_v27 = vsel %vm495_vm4, %v459_v22, %v511_v24  ;;  %v1946_v24 = vld [vmem:[%s2400_s6 + $0x1] ss:$0 sm:$0xff] }
  0xb0   : > { %v460_v23 = vpop.f32.mrf.mxu0 }
  0xb1   : > { %v461_v25 = vadd.f32 %v1913_v12, %v460_v23 }
  0xb3   : > { %vm496_vm5 = vcmp.gt.f32.partialorder %v461_v25, 0.0  ;;  %v512_v26 = vmul.f32 0.2, %v461_v25 }
  0xb5   : > { %v528_v28 = vsel %vm496_vm5, %v461_v25, %v512_v26 }
  0xb6   : > { %v542_v29 = vpack.c.bf16 %v528_v28, %v527_v27 }
  0xb8   : > { %v463_v30 = vpop.f32.mrf.mxu0  ;;  %1563 = vmatmul.msk.bf16.gmra.mxu1 %vm558_vm3, %v542_v29 }
  0xb9   : > { %v464_v31 = vadd.f32 %v1913_v12, %v463_v30 }
  0xbb   : > { %v513_v33 = vmul.f32 0.2, %v464_v31  ;;  %vm497_vm6 = vcmp.gt.f32.partialorder %v464_v31, 0.0 }
  0xbd   : > { %v529_v36 = vsel %vm497_vm6, %v464_v31, %v513_v33  ;;  %vm690_vm6 = vcmask 64512  }
  0xc0   : > { %v465_v32 = vpop.f32.mrf.mxu0 }
  0xc1   : > { %v466_v34 = vadd.f32 %v1913_v12, %v465_v32 }
  0xc3   : > { %vm498_vm7 = vcmp.gt.f32.partialorder %v466_v34, 0.0  ;;  %v514_v35 = vmul.f32 0.2, %v466_v34 }
  0xc5   : > { %v530_v37 = vsel %vm498_vm7, %v466_v34, %v514_v35 }
  0xc6   : > { %v543_v38 = vpack.c.bf16 %v530_v37, %v529_v36 }
  0xc8   : > { %v468_v39 = vpop.f32.mrf.mxu0  ;;  %1564 = vmatmul.msk.bf16.gmra.mxu1 %vm558_vm3, %v543_v38 }
  0xc9   : > { %v469_v40 = vadd.f32 %v1913_v12, %v468_v39 }
  0xcb   : > { %v515_v42 = vmul.f32 0.2, %v469_v40  ;;  %vm499_vm8 = vcmp.gt.f32.partialorder %v469_v40, 0.0 }
  0xcd   : > { %v531_v45 = vsel %vm499_vm8, %v469_v40, %v515_v42 }
  0xd0   : > { %v470_v41 = vpop.f32.mrf.mxu0 }
  0xd1   : > { %v471_v43 = vadd.f32 %v1913_v12, %v470_v41 }
  0xd3   : > { %vm500_vm9 = vcmp.gt.f32.partialorder %v471_v43, 0.0  ;;  %v516_v44 = vmul.f32 0.2, %v471_v43 }
  0xd5   : > { %v532_v46 = vsel %vm500_vm9, %v471_v43, %v516_v44 }
  0xd6   : > { %v544_v47 = vpack.c.bf16 %v532_v46, %v531_v45 }
  0xd8   : > { %v473_v48 = vpop.f32.mrf.mxu0  ;;  %1565 = vmatmul.msk.bf16.gmra.mxu1 %vm558_vm3, %v544_v47 }
  0xd9   : > { %v474_v49 = vadd.f32 %v1913_v12, %v473_v48 }
  0xdb   : > { %v517_v51 = vmul.f32 0.2, %v474_v49  ;;  %vm501_vm10 = vcmp.gt.f32.partialorder %v474_v49, 0.0 }
  0xdd   : > { %v533_v54 = vsel %vm501_vm10, %v474_v49, %v517_v51 }
  0xe0   : > { %v475_v50 = vpop.f32.mrf.mxu0 }
  0xe1   : > { %v476_v52 = vadd.f32 %v1913_v12, %v475_v50 }
  0xe3   : > { %vm502_vm11 = vcmp.gt.f32.partialorder %v476_v52, 0.0  ;;  %v518_v53 = vmul.f32 0.2, %v476_v52 }
  0xe5   : > { %v534_v55 = vsel %vm502_vm11, %v476_v52, %v518_v53 }
  0xe6   : > { %v545_v56 = vpack.c.bf16 %v534_v55, %v533_v54 }
  0xe8   : > { %v478_v57 = vpop.f32.mrf.mxu0  ;;  %1566 = vmatmul.msk.bf16.gmra.mxu1 %vm558_vm3, %v545_v56 }
  0xe9   : > { %v479_v58 = vadd.f32 %v1913_v12, %v478_v57 }
  0xeb   : > { %v519_v60 = vmul.f32 0.2, %v479_v58  ;;  %vm503_vm12 = vcmp.gt.f32.partialorder %v479_v58, 0.0 }
  0xed   : > { %v535_v63 = vsel %vm503_vm12, %v479_v58, %v519_v60 }
  0xf0   : > { %v480_v59 = vpop.f32.mrf.mxu0 }
  0xf1   : > { %v481_v61 = vadd.f32 %v1913_v12, %v480_v59 }
  0xf3   : > { %vm504_vm13 = vcmp.gt.f32.partialorder %v481_v61, 0.0  ;;  %v520_v62 = vmul.f32 0.2, %v481_v61 }
  0xf5   : > { %v536_v0 = vsel %vm504_vm13, %v481_v61, %v520_v62 }
  0xf6   : > { %v546_v1 = vpack.c.bf16 %v536_v0, %v535_v63 }
  0xf8   : > { %v483_v2 = vpop.f32.mrf.mxu0  ;;  %1567 = vmatmul.msk.bf16.gmra.mxu1 %vm558_vm3, %v546_v1 }
  0xf9   : > { %v484_v3 = vadd.f32 %v1913_v12, %v483_v2 }
  0xfb   : > { %v521_v5 = vmul.f32 0.2, %v484_v3  ;;  %vm505_vm14 = vcmp.gt.f32.partialorder %v484_v3, 0.0 }
  0xfd   : > { %v537_v8 = vsel %vm505_vm14, %v484_v3, %v521_v5 }
 0x100   : > { %v485_v4 = vpop.f32.mrf.mxu0 }
 0x101   : > { %v486_v6 = vadd.f32 %v1913_v12, %v485_v4 }
 0x103   : > { %vm506_vm15 = vcmp.gt.f32.partialorder %v486_v6, 0.0  ;;  %v522_v7 = vmul.f32 0.2, %v486_v6 }
 0x105   : > { %v538_v9 = vsel %vm506_vm15, %v486_v6, %v522_v7 }
 0x106   : > { %v547_v10 = vpack.c.bf16 %v538_v9, %v537_v8 }
 0x108   : > { %v488_v11 = vpop.f32.mrf.mxu0  ;;  %1568 = vmatmul.msk.bf16.gmra.mxu1 %vm558_vm3, %v547_v10 }
 0x109   : > { %v489_v13 = vadd.f32 %v1913_v12, %v488_v11 }
 0x10b   : > { %v523_v16 = vmul.f32 0.2, %v489_v13  ;;  %vm507_vm1 = vcmp.gt.f32.partialorder %v489_v13, 0.0 }
 0x10d   : > { %v539_v20 = vsel %vm507_vm1, %v489_v13, %v523_v16 }
 0x110   : > { %v490_v14 = vpop.f32.mrf.mxu0 }
 0x111   : > { %v491_v17 = vadd.f32 %v1913_v12, %v490_v14 }
 0x113   : > { %vm508_vm2 = vcmp.gt.f32.partialorder %v491_v17, 0.0  ;;  %v524_v19 = vmul.f32 0.2, %v491_v17 }
 0x115   : > { %v540_v21 = vsel %vm508_vm2, %v491_v17, %v524_v19 }
 0x116   : > { %v548_v22 = vpack.c.bf16 %v540_v21, %v539_v20 }
 0x118   : > { %1569 = vmatmul.msk.bf16.gmra.mxu1 %vm558_vm3, %v548_v22 }
 0x125   : > { %v592_v23 = vpop.f32.mrf.mxu1 }
 0x126   : > { %v593_v25 = vadd.f32 %v1946_v24, %v592_v23 }
 0x128   : > { %v648_v26 = vmul.f32 0.2, %v593_v25  ;;  %vm632_vm4 = vcmp.gt.f32.partialorder %v593_v25, 0.0 }
 0x12a   : > { %v664_v29 = vsel %vm632_vm4, %v593_v25, %v648_v26 }
 0x12d   : > { %v594_v12 = vpop.f32.mrf.mxu1 }
 0x12e   : > { %v595_v27 = vadd.f32 %v1946_v24, %v594_v12 }
 0x130   : > { %vm633_vm5 = vcmp.gt.f32.partialorder %v595_v27, 0.0  ;;  %v649_v28 = vmul.f32 0.2, %v595_v27 }
 0x132   : > { %v665_v30 = vsel %vm633_vm5, %v595_v27, %v649_v28 }
 0x133   : > { %v680_v31 = vpack.c.bf16 %v665_v30, %v664_v29 }
 0x135   : > { %v597_v32 = vpop.f32.mrf.mxu1  ;;  %1570 = vmatmul.msk.bf16.vlgmr.msra.gmra.mxu2 %vm690_vm6, %v680_v31 }
 0x136   : > { %v598_v33 = vadd.f32 %v1946_v24, %v597_v32  ;;  %v824_v32 = vld [vmem:[%s2399_s5] sm:$0xf] }
 0x138   : > { %v650_v35 = vmul.f32 0.2, %v598_v33  ;;  %vm634_vm3 = vcmp.gt.f32.partialorder %v598_v33, 0.0 }
 0x13a   : > { %v666_v38 = vsel %vm634_vm3, %v598_v33, %v650_v35  ;;  %v851_v33 = vsel %vm715_vm0, %v824_v32, 0 }
 0x13b   : > { %860 = vmatpush.bf16.msra.mxu3 %v851_v33 }
 0x13d   : > { %v599_v34 = vpop.f32.mrf.mxu1 }
 0x13e   : > { %v600_v36 = vadd.f32 %v1946_v24, %v599_v34 }
 0x140   : > { %vm635_vm7 = vcmp.gt.f32.partialorder %v600_v36, 0.0  ;;  %v651_v37 = vmul.f32 0.2, %v600_v36 }
 0x142   : > { %v667_v39 = vsel %vm635_vm7, %v600_v36, %v651_v37 }
 0x143   : > { %v681_v40 = vpack.c.bf16 %v667_v39, %v666_v38 }
 0x145   : > { %v602_v41 = vpop.f32.mrf.mxu1  ;;  %1571 = vmatmul.msk.bf16.gmra.mxu2 %vm690_vm6, %v681_v40 }
 0x146   : > { %v603_v42 = vadd.f32 %v1946_v24, %v602_v41 }
 0x148   : > { %v652_v44 = vmul.f32 0.2, %v603_v42  ;;  %vm636_vm8 = vcmp.gt.f32.partialorder %v603_v42, 0.0 }
 0x14a   : > { %v668_v47 = vsel %vm636_vm8, %v603_v42, %v652_v44 }
 0x14d   : > { %v604_v43 = vpop.f32.mrf.mxu1 }
 0x14e   : > { %v605_v45 = vadd.f32 %v1946_v24, %v604_v43 }
 0x150   : > { %vm637_vm9 = vcmp.gt.f32.partialorder %v605_v45, 0.0  ;;  %v653_v46 = vmul.f32 0.2, %v605_v45 }
 0x152   : > { %v669_v48 = vsel %vm637_vm9, %v605_v45, %v653_v46 }
 0x153   : > { %v682_v49 = vpack.c.bf16 %v669_v48, %v668_v47 }
 0x155   : > { %v607_v50 = vpop.f32.mrf.mxu1  ;;  %1572 = vmatmul.msk.bf16.gmra.mxu2 %vm690_vm6, %v682_v49 }
 0x156   : > { %v608_v51 = vadd.f32 %v1946_v24, %v607_v50 }
 0x158   : > { %v654_v53 = vmul.f32 0.2, %v608_v51  ;;  %vm638_vm10 = vcmp.gt.f32.partialorder %v608_v51, 0.0 }
 0x15a   : > { %v670_v56 = vsel %vm638_vm10, %v608_v51, %v654_v53 }
 0x15d   : > { %v609_v52 = vpop.f32.mrf.mxu1 }
 0x15e   : > { %v610_v54 = vadd.f32 %v1946_v24, %v609_v52 }
 0x160   : > { %vm639_vm11 = vcmp.gt.f32.partialorder %v610_v54, 0.0  ;;  %v655_v55 = vmul.f32 0.2, %v610_v54 }
 0x162   : > { %v671_v57 = vsel %vm639_vm11, %v610_v54, %v655_v55 }
 0x163   : > { %v683_v58 = vpack.c.bf16 %v671_v57, %v670_v56 }
 0x165   : > { %v612_v59 = vpop.f32.mrf.mxu1  ;;  %1573 = vmatmul.msk.bf16.gmra.mxu2 %vm690_vm6, %v683_v58 }
 0x166   : > { %v613_v60 = vadd.f32 %v1946_v24, %v612_v59 }
 0x168   : > { %v656_v62 = vmul.f32 0.2, %v613_v60  ;;  %vm640_vm12 = vcmp.gt.f32.partialorder %v613_v60, 0.0 }
 0x16a   : > { %v672_v1 = vsel %vm640_vm12, %v613_v60, %v656_v62 }
 0x16d   : > { %v614_v61 = vpop.f32.mrf.mxu1 }
 0x16e   : > { %v615_v63 = vadd.f32 %v1946_v24, %v614_v61 }
 0x170   : > { %vm641_vm13 = vcmp.gt.f32.partialorder %v615_v63, 0.0  ;;  %v657_v0 = vmul.f32 0.2, %v615_v63 }
 0x172   : > { %v673_v2 = vsel %vm641_vm13, %v615_v63, %v657_v0 }
 0x173   : > { %v684_v3 = vpack.c.bf16 %v673_v2, %v672_v1 }
 0x175   : > { %v617_v4 = vpop.f32.mrf.mxu1  ;;  %1574 = vmatmul.msk.bf16.gmra.mxu2 %vm690_vm6, %v684_v3  ;;  %v1111_v3 = vld [vmem:[%s1995_s29 + $0x8] sm:$0xff] }
 0x176   : > { %v618_v5 = vadd.f32 %v1946_v24, %v617_v4  ;;  %v1796_v4 = vmov 0  }
 0x177   : > { %1662 = vset.pattern.permute.xlu1 %v1796_v4  ;;  %1661 = vset.pattern.permute.xlu0 %v1796_v4 }
 0x178   : > { %v658_v7 = vmul.f32 0.2, %v618_v5  ;;  %vm642_vm14 = vcmp.gt.f32.partialorder %v618_v5, 0.0  ;;  %1132 = vperm.xlu1 %1662, %v1111_v3   ;;  %1663 = vset.pattern.permute.xlu2 %v1796_v4 }
 0x17a   : > { %v674_v10 = vsel %vm642_vm14, %v618_v5, %v658_v7 }
 0x17d   : > { %v619_v6 = vpop.f32.mrf.mxu1 }
 0x17e   : > { %v620_v8 = vadd.f32 %v1946_v24, %v619_v6 }
 0x180   : > { %vm643_vm15 = vcmp.gt.f32.partialorder %v620_v8, 0.0  ;;  %v659_v9 = vmul.f32 0.2, %v620_v8 }
 0x182   : > { %v675_v11 = vsel %vm643_vm15, %v620_v8, %v659_v9  ;;  %v1115_v9 = vld [vmem:[%s1995_s29 + $0x28] sm:$0xff] }
 0x183   : > { %v685_v13 = vpack.c.bf16 %v675_v11, %v674_v10  ;;  %1144 = vperm.xlu1 %1662, %v1115_v9  }
 0x185   : > { %v622_v14 = vpop.f32.mrf.mxu1  ;;  %1575 = vmatmul.msk.bf16.gmra.mxu2 %vm690_vm6, %v685_v13 }
 0x186   : > { %v623_v15 = vadd.f32 %v1946_v24, %v622_v14 }
 0x188   : > { %v660_v17 = vmul.f32 0.2, %v623_v15  ;;  %vm644_vm1 = vcmp.gt.f32.partialorder %v623_v15, 0.0 }
 0x18a   : > { %v676_v20 = vsel %vm644_vm1, %v623_v15, %v660_v17  ;;  %v1110_v17 = vld [vmem:[%s1995_s29] sm:$0xff] }
 0x18b   : > { %1129 = vperm.xlu0 %1661, %v1110_v17  }
 0x18d   : > { %v624_v16 = vpop.f32.mrf.mxu1 }
 0x18e   : > { %v625_v18 = vadd.f32 %v1946_v24, %v624_v16  ;;  %v1117_v16 = vld [vmem:[%s1995_s29 + $0x38] sm:$0xff] }
 0x18f   : > { %1150 = vperm.xlu1 %1662, %v1117_v16  }
 0x190   : > { %vm645_vm2 = vcmp.gt.f32.partialorder %v625_v18, 0.0  ;;  %v661_v19 = vmul.f32 0.2, %v625_v18 }
 0x192   : > { %v677_v21 = vsel %vm645_vm2, %v625_v18, %v661_v19  ;;  %v1112_v18 = vld [vmem:[%s1995_s29 + $0x10] sm:$0xff] }
 0x193   : > { %v686_v22 = vpack.c.bf16 %v677_v21, %v676_v20  ;;  %1135 = vperm.xlu2 %1663, %v1112_v18  }
 0x195   : > { %v627_v23 = vpop.f32.mrf.mxu1  ;;  %1576 = vmatmul.msk.bf16.gmra.mxu2 %vm690_vm6, %v686_v22 }
 0x196   : > { %v628_v25 = vadd.f32 %v1946_v24, %v627_v23  ;;  %v1118_v23 = vld [vmem:[%s1995_s29 + $0x40] sm:$0xff] }
 0x197   : > { %1153 = vperm.xlu1 %1662, %v1118_v23  }
 0x198   : > { %v662_v26 = vmul.f32 0.2, %v628_v25  ;;  %vm646_vm4 = vcmp.gt.f32.partialorder %v628_v25, 0.0 }
 0x19a   : > { %v678_v29 = vsel %vm646_vm4, %v628_v25, %v662_v26  ;;  %v1113_v25 = vld [vmem:[%s1995_s29 + $0x18] sm:$0xff] }
 0x19b   : > { %1138 = vperm.xlu2 %1663, %v1113_v25  }
 0x19d   : > { %v629_v12 = vpop.f32.mrf.mxu1 }
 0x19e   : > { %v630_v27 = vadd.f32 %v1946_v24, %v629_v12  ;;  %v1979_v24 = vld [vmem:[%s2400_s6 + $0x2] ss:$0 sm:$0xff] }
 0x1a0   : > { %vm647_vm5 = vcmp.gt.f32.partialorder %v630_v27, 0.0  ;;  %v663_v28 = vmul.f32 0.2, %v630_v27 }
 0x1a2   : > { %v679_v30 = vsel %vm647_vm5, %v630_v27, %v663_v28 }
 0x1a3   : > { %v687_v31 = vpack.c.bf16 %v679_v30, %v678_v29  ;;  %v1119_v30 = vld [vmem:[%s1995_s29 + $0x48] sm:$0xff] }
 0x1a4   : > { %1156 = vperm.xlu1 %1662, %v1119_v30  }
 0x1a5   : > { %1577 = vmatmul.msk.bf16.gmra.mxu2 %vm690_vm6, %v687_v31  ;;  %v1114_v31 = vld [vmem:[%s1995_s29 + $0x20] sm:$0xff] }
 0x1a6   : > { %1141 = vperm.xlu2 %1663, %v1114_v31  }
 0x1b8   : > { %v728_v34 = vpop.f32.mrf.mxu2 }
 0x1b9   : > { %v729_v35 = vadd.f32 %v1979_v24, %v728_v34 }
 0x1bb   : > { %v784_v37 = vmul.f32 0.2, %v729_v35  ;;  %vm768_vm3 = vcmp.gt.f32.partialorder %v729_v35, 0.0 }
 0x1bd   : > { %v800_v40 = vsel %vm768_vm3, %v729_v35, %v784_v37 }
 0x1c0   : > { %v730_v36 = vpop.f32.mrf.mxu2 }
 0x1c1   : > { %v731_v38 = vadd.f32 %v1979_v24, %v730_v36  ;;  %v1116_v36 = vld [vmem:[%s1995_s29 + $0x30] sm:$0xff] }
 0x1c2   : > { %1147 = vperm.xlu2 %1663, %v1116_v36  }
 0x1c3   : > { %vm769_vm7 = vcmp.gt.f32.partialorder %v731_v38, 0.0  ;;  %v785_v39 = vmul.f32 0.2, %v731_v38 }
 0x1c5   : > { %v801_v41 = vsel %vm769_vm7, %v731_v38, %v785_v39 }
 0x1c6   : > { %v816_v42 = vpack.c.bf16 %v801_v41, %v800_v40  ;;  %v1120_v41 = vld [vmem:[%s1995_s29 + $0x50] sm:$0xff] }
 0x1c8   : > { %v733_v43 = vpop.f32.mrf.mxu2  ;;  %1578 = vmatmul.msk.bf16.vlgmr.msra.gmra.mxu3 %vm690_vm6, %v816_v42 }
 0x1c9   : > { %v734_v44 = vadd.f32 %v1979_v24, %v733_v43 }
 0x1ca   : > { %1159 = vperm.xlu2 %1663, %v1120_v41  }
 0x1cb   : > { %v786_v46 = vmul.f32 0.2, %v734_v44  ;;  %vm770_vm0 = vcmp.gt.f32.partialorder %v734_v44, 0.0 }
 0x1cd   : > { %v802_v49 = vsel %vm770_vm0, %v734_v44, %v786_v46 }
 0x1d0   : > { %v735_v45 = vpop.f32.mrf.mxu2 }
 0x1d1   : > { %v736_v47 = vadd.f32 %v1979_v24, %v735_v45 }
 0x1d3   : > { %vm771_vm8 = vcmp.gt.f32.partialorder %v736_v47, 0.0  ;;  %v787_v48 = vmul.f32 0.2, %v736_v47 }
 0x1d5   : > { %v803_v50 = vsel %vm771_vm8, %v736_v47, %v787_v48 }
 0x1d6   : > { %v817_v51 = vpack.c.bf16 %v803_v50, %v802_v49 }
 0x1d8   : > { %v738_v52 = vpop.f32.mrf.mxu2  ;;  %1579 = vmatmul.msk.bf16.gmra.mxu3 %vm690_vm6, %v817_v51 }
 0x1d9   : > { %v739_v53 = vadd.f32 %v1979_v24, %v738_v52 }
 0x1db   : > { %v788_v55 = vmul.f32 0.2, %v739_v53  ;;  %vm772_vm9 = vcmp.gt.f32.partialorder %v739_v53, 0.0 }
 0x1dd   : > { %v804_v58 = vsel %vm772_vm9, %v739_v53, %v788_v55  ;;  %v2025_v55 = vld [vmem:[%s2400_s6 + $0x3] ss:$0 sm:$0xff] }
 0x1e0   : > { %v740_v54 = vpop.f32.mrf.mxu2 }
 0x1e1   : > { %v741_v56 = vadd.f32 %v1979_v24, %v740_v54 }
 0x1e3   : > { %vm773_vm10 = vcmp.gt.f32.partialorder %v741_v56, 0.0  ;;  %v789_v57 = vmul.f32 0.2, %v741_v56 }
 0x1e5   : > { %v805_v59 = vsel %vm773_vm10, %v741_v56, %v789_v57 }
 0x1e6   : > { %v818_v60 = vpack.c.bf16 %v805_v59, %v804_v58 }
 0x1e8   : > { %v743_v61 = vpop.f32.mrf.mxu2  ;;  %1580 = vmatmul.msk.bf16.gmra.mxu3 %vm690_vm6, %v818_v60 }
 0x1e9   : > { %v744_v62 = vadd.f32 %v1979_v24, %v743_v61 }
 0x1eb   : > { %v790_v0 = vmul.f32 0.2, %v744_v62  ;;  %vm774_vm11 = vcmp.gt.f32.partialorder %v744_v62, 0.0 }
 0x1ed   : > { %v806_v5 = vsel %vm774_vm11, %v744_v62, %v790_v0 }
 0x1f0   : > { %v745_v63 = vpop.f32.mrf.mxu2 }
 0x1f1   : > { %v746_v1 = vadd.f32 %v1979_v24, %v745_v63 }
 0x1f3   : > { %vm775_vm12 = vcmp.gt.f32.partialorder %v746_v1, 0.0  ;;  %v791_v2 = vmul.f32 0.2, %v746_v1 }
 0x1f5   : > { %v807_v6 = vsel %vm775_vm12, %v746_v1, %v791_v2 }
 0x1f6   : > { %v819_v7 = vpack.c.bf16 %v807_v6, %v806_v5 }
 0x1f8   : > { %v748_v8 = vpop.f32.mrf.mxu2  ;;  %1581 = vmatmul.msk.bf16.gmra.mxu3 %vm690_vm6, %v819_v7 }
 0x1f9   : > { %v749_v10 = vadd.f32 %v1979_v24, %v748_v8 }
 0x1fb   : > { %v792_v13 = vmul.f32 0.2, %v749_v10  ;;  %vm776_vm13 = vcmp.gt.f32.partialorder %v749_v10, 0.0 }
 0x1fd   : > { %v808_v19 = vsel %vm776_vm13, %v749_v10, %v792_v13 }
 0x200   : > { %v750_v11 = vpop.f32.mrf.mxu2 }
 0x201   : > { %v751_v14 = vadd.f32 %v1979_v24, %v750_v11 }
 0x203   : > { %vm777_vm14 = vcmp.gt.f32.partialorder %v751_v14, 0.0  ;;  %v793_v15 = vmul.f32 0.2, %v751_v14 }
 0x205   : > { %v809_v20 = vsel %vm777_vm14, %v751_v14, %v793_v15 }
 0x206   : > { %v820_v21 = vpack.c.bf16 %v809_v20, %v808_v19 }
 0x208   : > { %v753_v22 = vpop.f32.mrf.mxu2  ;;  %1582 = vmatmul.msk.bf16.gmra.mxu3 %vm690_vm6, %v820_v21 }
 0x209   : > { %v754_v12 = vadd.f32 %v1979_v24, %v753_v22 }
 0x20b   : > { %v794_v27 = vmul.f32 0.2, %v754_v12  ;;  %vm778_vm15 = vcmp.gt.f32.partialorder %v754_v12, 0.0 }
 0x20d   : > { %v810_v32 = vsel %vm778_vm15, %v754_v12, %v794_v27  ;;  %v2082_v12 = vpop.permute.xlu1 %1132 }
 0x210   : > { %v755_v26 = vpop.f32.mrf.mxu2 }
 0x211   : > { %v756_v28 = vadd.f32 %v1979_v24, %v755_v26 }
 0x213   : > { %vm779_vm1 = vcmp.gt.f32.partialorder %v756_v28, 0.0  ;;  %v795_v29 = vmul.f32 0.2, %v756_v28 }
 0x215   : > { %v811_v33 = vsel %vm779_vm1, %v756_v28, %v795_v29  ;;  %v2089_v30 = vpop.permute.xlu1 %1144 }
 0x216   : > { %v821_v34 = vpack.c.bf16 %v811_v33, %v810_v32  ;;  %v2096_v33 = vpop.permute.xlu2 %1135 }
 0x218   : > { %v758_v35 = vpop.f32.mrf.mxu2  ;;  %1583 = vmatmul.msk.bf16.gmra.mxu3 %vm690_vm6, %v821_v34 }
 0x219   : > { %v759_v37 = vadd.f32 %v1979_v24, %v758_v35 }
 0x21b   : > { %v796_v39 = vmul.f32 0.2, %v759_v37  ;;  %vm780_vm2 = vcmp.gt.f32.partialorder %v759_v37, 0.0 }
 0x21d   : > { %v812_v43 = vsel %vm780_vm2, %v759_v37, %v796_v39  ;;  %v2101_v36 = vpop.permute.xlu1 %1150 }
 0x220   : > { %v760_v38 = vpop.f32.mrf.mxu2 }
 0x221   : > { %v761_v40 = vadd.f32 %v1979_v24, %v760_v38  ;;  %v2105_v38 = vpop.permute.xlu0 %1129 }
 0x223   : > { %vm781_vm4 = vcmp.gt.f32.partialorder %v761_v40, 0.0  ;;  %v797_v42 = vmul.f32 0.2, %v761_v40 }
 0x225   : > { %v813_v44 = vsel %vm781_vm4, %v761_v40, %v797_v42  ;;  %v2107_v40 = vpop.permute.xlu2 %1138 }
 0x226   : > { %v822_v45 = vpack.c.bf16 %v813_v44, %v812_v43  ;;  %v2114_v43 = vpop.permute.xlu1 %1153 }
 0x228   : > { %v763_v46 = vpop.f32.mrf.mxu2  ;;  %1584 = vmatmul.msk.bf16.gmra.mxu3 %vm690_vm6, %v822_v45 }
 0x229   : > { %v764_v47 = vadd.f32 %v1979_v24, %v763_v46 }
 0x22b   : > { %v798_v49 = vmul.f32 0.2, %v764_v47  ;;  %vm782_vm5 = vcmp.gt.f32.partialorder %v764_v47, 0.0 }
 0x22d   : > { %v814_v52 = vsel %vm782_vm5, %v764_v47, %v798_v49  ;;  %v2123_v49 = vpop.permute.xlu2 %1141 }
 0x230   : > { %v765_v48 = vpop.f32.mrf.mxu2 }
 0x231   : > { %v766_v50 = vadd.f32 %v1979_v24, %v765_v48 }
 0x233   : > { %vm783_vm3 = vcmp.gt.f32.partialorder %v766_v50, 0.0  ;;  %v799_v51 = vmul.f32 0.2, %v766_v50 }
 0x235   : > { %v815_v53 = vsel %vm783_vm3, %v766_v50, %v799_v51  ;;  %v2127_v51 = vpop.permute.xlu1 %1156 }
 0x236   : > { %v823_v54 = vpack.c.bf16 %v815_v53, %v814_v52 }
 0x238   : > { %1585 = vmatmul.msk.bf16.gmra.mxu3 %vm690_vm6, %v823_v54 }
 0x24b   : > { %v862_v56 = vpop.f32.mrf.mxu3 }
 0x24c   : > { %v2028_v57 = vadd.f32 %v2025_v55, %v862_v56 }
 0x24e   : > { %v902_v24 = vsel %vm690_vm6, %v2028_v57, -inf }
 0x24f   : > { %903 = vmax.xlane.f32.xlu0 %v902_v24  ;;  %v2134_v24 = vpop.permute.xlu2 %1147 }
 0x253   : > { %v864_v58 = vpop.f32.mrf.mxu3 }
 0x254   : > { %v2033_v59 = vadd.f32 %v2025_v55, %v864_v58 }
 0x256   : > { %v905_v60 = vsel %vm690_vm6, %v2033_v59, -inf }
 0x257   : > { %906 = vmax.xlane.f32.xlu0 %v905_v60 }
 0x25b   : > { %v867_v61 = vpop.f32.mrf.mxu3 }
 0x25c   : > { %v2038_v62 = vadd.f32 %v2025_v55, %v867_v61 }
 0x25e   : > { %v908_v63 = vsel %vm690_vm6, %v2038_v62, -inf }
 0x25f   : > { %909 = vmax.xlane.f32.xlu1 %v908_v63 }
 0x263   : > { %v869_v0 = vpop.f32.mrf.mxu3 }
 0x264   : > { %v2043_v1 = vadd.f32 %v2025_v55, %v869_v0 }
 0x266   : > { %v911_v2 = vsel %vm690_vm6, %v2043_v1, -inf }
 0x267   : > { %912 = vmax.xlane.f32.xlu1 %v911_v2  ;;  %v2141_v2 = vpop.permute.xlu2 %1159 }
 0x26b   : > { %v872_v3 = vpop.f32.mrf.mxu3 }
 0x26c   : > { %v2048_v4 = vadd.f32 %v2025_v55, %v872_v3 }
 0x26e   : > { %v914_v5 = vsel %vm690_vm6, %v2048_v4, -inf }
 0x26f   : > { %915 = vmax.xlane.f32.xlu2 %v914_v5 }
 0x273   : > { %v874_v6 = vpop.f32.mrf.mxu3 }
 0x274   : > { %v2053_v7 = vadd.f32 %v2025_v55, %v874_v6 }
 0x276   : > { %v917_v8 = vsel %vm690_vm6, %v2053_v7, -inf }
 0x277   : > { %918 = vmax.xlane.f32.xlu2 %v917_v8 }
 0x27b   : > { %v877_v9 = vpop.f32.mrf.mxu3 }
 0x27c   : > { %v2058_v10 = vadd.f32 %v2025_v55, %v877_v9 }
 0x27e   : > { %v920_v11 = vsel %vm690_vm6, %v2058_v10, -inf }
 0x27f   : > { %921 = vmax.xlane.f32.xlu0 %v920_v11 }
 0x283   : > { %v879_v13 = vpop.f32.mrf.mxu3 }
 0x284   : > { %v2063_v14 = vadd.f32 %v2025_v55, %v879_v13 }
 0x286   : > { %v923_v15 = vsel %vm690_vm6, %v2063_v14, -inf }
 0x287   : > { %924 = vmax.xlane.f32.xlu1 %v923_v15 }
 0x28b   : > { %v882_v16 = vpop.f32.mrf.mxu3 }
 0x28c   : > { %v2068_v17 = vadd.f32 %v2025_v55, %v882_v16 }
 0x28e   : > { %v926_v18 = vsel %vm690_vm6, %v2068_v17, -inf }
 0x28f   : > { %927 = vmax.xlane.f32.xlu2 %v926_v18 }
 0x293   : > { %v884_v19 = vpop.f32.mrf.mxu3 }
 0x294   : > { %v2073_v20 = vadd.f32 %v2025_v55, %v884_v19 }
 0x296   : > { %v929_v21 = vsel %vm690_vm6, %v2073_v20, -inf }
 0x297   : > { %930 = vmax.xlane.f32.xlu0 %v929_v21 }
 0x29b   : > { %v887_v22 = vpop.f32.mrf.mxu3 }
 0x29c   : > { %v2078_v23 = vadd.f32 %v2025_v55, %v887_v22 }
 0x29e   : > { %v932_v25 = vsel %vm690_vm6, %v2078_v23, -inf }
 0x29f   : > { %933 = vmax.xlane.f32.xlu1 %v932_v25 }
 0x2a3   : > { %v889_v26 = vpop.f32.mrf.mxu3 }
 0x2a4   : > { %v2085_v27 = vadd.f32 %v2025_v55, %v889_v26 }
 0x2a6   : > { %v935_v28 = vsel %vm690_vm6, %v2085_v27, -inf }
 0x2a7   : > { %936 = vmax.xlane.f32.xlu2 %v935_v28 }
 0x2ab   : > { %v892_v29 = vpop.f32.mrf.mxu3 }
 0x2ac   : > { %v2092_v31 = vadd.f32 %v2025_v55, %v892_v29 }
 0x2ae   : > { %v938_v32 = vsel %vm690_vm6, %v2092_v31, -inf }
 0x2af   : > { %939 = vmax.xlane.f32.xlu0 %v938_v32 }
 0x2b3   : > { %v894_v34 = vpop.f32.mrf.mxu3 }
 0x2b4   : > { %v2099_v35 = vadd.f32 %v2025_v55, %v894_v34 }
 0x2b6   : > { %v941_v37 = vsel %vm690_vm6, %v2099_v35, -inf }
 0x2b7   : > { %942 = vmax.xlane.f32.xlu1 %v941_v37 }
 0x2bb   : > { %v897_v39 = vpop.f32.mrf.mxu3 }
 0x2bc   : > { %v2110_v41 = vadd.f32 %v2025_v55, %v897_v39 }
 0x2be   : > { %v944_v42 = vsel %vm690_vm6, %v2110_v41, -inf }
 0x2bf   : > { %945 = vmax.xlane.f32.xlu2 %v944_v42 }
 0x2c2   : > { %v2116_v44 = vpop.xlane.xlu0 %903 }
 0x2c3   : > { %v950_v45 = vsub.f32 %v2028_v57, %v2116_v44  ;;  %v899_v46 = vpop.f32.mrf.mxu3 }
 0x2c4   : > { %v2121_v47 = vadd.f32 %v2025_v55, %v899_v46 }
 0x2c5   : > { %v966_v48 = vmul.f32 1.442695, %v950_v45 }
 0x2c6   : > { %v947_v50 = vsel %vm690_vm6, %v2121_v47, -inf }
 0x2c7   : > { %1668 = vpow2.f32 %v966_v48  ;;  %948 = vmax.xlane.f32.xlu0 %v947_v50 }
 0x2ca   : > { %v2129_v52 = vpop.xlane.xlu0 %906 }
 0x2cb   : > { %v951_v53 = vsub.f32 %v2033_v59, %v2129_v52 }
 0x2cd   : > { %v1669_v54 = vpop.eup %1668  ;;  %v968_v56 = vmul.f32 1.442695, %v951_v53 }
 0x2ce   : > { %v998_v55 = vsel %vm690_vm6, %v1669_v54, 0.0 }
 0x2cf   : > { %1670 = vpow2.f32 %v968_v56  ;;  %999 = vadd.xlane.f32.xlu1 %v998_v55 }
 0x2d2   : > { %v2136_v58 = vpop.xlane.xlu1 %909 }
 0x2d3   : > { %v952_v60 = vsub.f32 %v2038_v62, %v2136_v58 }
 0x2d5   : > { %v1671_v61 = vpop.eup %1670  ;;  %v970_v63 = vmul.f32 1.442695, %v952_v60 }
 0x2d6   : > { %v1001_v0 = vsel %vm690_vm6, %v1671_v61, 0.0 }
 0x2d7   : > { %1672 = vpow2.f32 %v970_v63  ;;  %1002 = vadd.xlane.f32.xlu2 %v1001_v0 }
 0x2da   : > { %v2143_v3 = vpop.xlane.xlu1 %912 }
 0x2db   : > { %v953_v5 = vsub.f32 %v2043_v1, %v2143_v3 }
 0x2dd   : > { %v1673_v6 = vpop.eup %1672  ;;  %v972_v8 = vmul.f32 1.442695, %v953_v5 }
 0x2de   : > { %v1004_v9 = vsel %vm690_vm6, %v1673_v6, 0.0 }
 0x2df   : > { %1674 = vpow2.f32 %v972_v8  ;;  %1005 = vadd.xlane.f32.xlu0 %v1004_v9 }
 0x2e2   : > { %v2148_v11 = vpop.xlane.xlu2 %915 }
 0x2e3   : > { %v954_v13 = vsub.f32 %v2048_v4, %v2148_v11 }
 0x2e5   : > { %v1675_v15 = vpop.eup %1674  ;;  %v974_v16 = vmul.f32 1.442695, %v954_v13 }
 0x2e6   : > { %v1007_v18 = vsel %vm690_vm6, %v1675_v15, 0.0 }
 0x2e7   : > { %1676 = vpow2.f32 %v974_v16  ;;  %1008 = vadd.xlane.f32.xlu1 %v1007_v18 }
 0x2ea   : > { %v2153_v19 = vpop.xlane.xlu2 %918 }
 0x2eb   : > { %v955_v21 = vsub.f32 %v2053_v7, %v2153_v19 }
 0x2ed   : > { %v1677_v22 = vpop.eup %1676  ;;  %v976_v25 = vmul.f32 1.442695, %v955_v21 }
 0x2ee   : > { %v1010_v26 = vsel %vm690_vm6, %v1677_v22, 0.0 }
 0x2ef   : > { %1678 = vpow2.f32 %v976_v25  ;;  %1011 = vadd.xlane.f32.xlu2 %v1010_v26 }
 0x2f2   : > { %v2158_v28 = vpop.xlane.xlu0 %921 }
 0x2f3   : > { %v956_v29 = vsub.f32 %v2058_v10, %v2158_v28 }
 0x2f5   : > { %v1679_v32 = vpop.eup %1678  ;;  %v978_v34 = vmul.f32 1.442695, %v956_v29 }
 0x2f6   : > { %v1013_v37 = vsel %vm690_vm6, %v1679_v32, 0.0 }
 0x2f7   : > { %1680 = vpow2.f32 %v978_v34  ;;  %1014 = vadd.xlane.f32.xlu0 %v1013_v37 }
 0x2fa   : > { %v2163_v39 = vpop.xlane.xlu1 %924 }
 0x2fb   : > { %v957_v42 = vsub.f32 %v2063_v14, %v2163_v39 }
 0x2fd   : > { %v1681_v45 = vpop.eup %1680  ;;  %v980_v46 = vmul.f32 1.442695, %v957_v42 }
 0x2fe   : > { %v1016_v48 = vsel %vm690_vm6, %v1681_v45, 0.0 }
 0x2ff   : > { %1682 = vpow2.f32 %v980_v46  ;;  %1017 = vadd.xlane.f32.xlu1 %v1016_v48 }
 0x302   : > { %v2168_v50 = vpop.xlane.xlu2 %927 }
 0x303   : > { %v958_v53 = vsub.f32 %v2068_v17, %v2168_v50 }
 0x305   : > { %v1683_v54 = vpop.eup %1682  ;;  %v982_v56 = vmul.f32 1.442695, %v958_v53  ;;  %v1122_v53 = vld [vmem:[%s1995_s29 + $0x60] sm:$0xff] }
 0x306   : > { %v1019_v55 = vsel %vm690_vm6, %v1683_v54, 0.0 }
 0x307   : > { %1684 = vpow2.f32 %v982_v56  ;;  %1020 = vadd.xlane.f32.xlu2 %v1019_v55 }
 0x30a   : > { %v2173_v60 = vpop.xlane.xlu0 %930 }
 0x30b   : > { %v959_v61 = vsub.f32 %v2073_v20, %v2173_v60 }
 0x30d   : > { %v1685_v63 = vpop.eup %1684  ;;  %v984_v0 = vmul.f32 1.442695, %v959_v61 }
 0x30e   : > { %v1022_v5 = vsel %vm690_vm6, %v1685_v63, 0.0 }
 0x30f   : > { %1686 = vpow2.f32 %v984_v0  ;;  %1023 = vadd.xlane.f32.xlu2 %v1022_v5  ;;  %v1124_v0 = vld [vmem:[%s1995_s29 + $0x70] sm:$0xff] }
 0x312   : > { %v2178_v6 = vpop.xlane.xlu1 %933 }
 0x313   : > { %v960_v8 = vsub.f32 %v2078_v23, %v2178_v6 }
 0x315   : > { %v1687_v9 = vpop.eup %1686  ;;  %v986_v13 = vmul.f32 1.442695, %v960_v8 }
 0x316   : > { %v1025_v15 = vsel %vm690_vm6, %v1687_v9, 0.0 }
 0x317   : > { %1688 = vpow2.f32 %v986_v13  ;;  %1026 = vadd.xlane.f32.xlu1 %v1025_v15  ;;  %v1123_v13 = vld [vmem:[%s1995_s29 + $0x68] sm:$0xff] }
 0x31a   : > { %v2183_v16 = vpop.xlane.xlu2 %936 }
 0x31b   : > { %v961_v18 = vsub.f32 %v2085_v27, %v2183_v16 }
 0x31d   : > { %v1689_v21 = vpop.eup %1688  ;;  %v988_v22 = vmul.f32 1.442695, %v961_v18 }
 0x31e   : > { %v1028_v25 = vsel %vm690_vm6, %v1689_v21, 0.0 }
 0x31f   : > { %1690 = vpow2.f32 %v988_v22  ;;  %1029 = vadd.xlane.f32.xlu0 %v1028_v25  ;;  %v1125_v22 = vld [vmem:[%s1995_s29 + $0x78] sm:$0xff] }
 0x322   : > { %v2188_v26 = vpop.xlane.xlu0 %939 }
 0x323   : > { %v962_v29 = vsub.f32 %v2092_v31, %v2188_v26 }
 0x325   : > { %v1691_v32 = vpop.eup %1690  ;;  %v990_v34 = vmul.f32 1.442695, %v962_v29 }
 0x326   : > { %v1031_v37 = vsel %vm690_vm6, %v1691_v32, 0.0 }
 0x327   : > { %1692 = vpow2.f32 %v990_v34  ;;  %1032 = vadd.xlane.f32.xlu2 %v1031_v37 }
 0x32a   : > { %v2193_v42 = vpop.xlane.xlu1 %942 }
 0x32b   : > { %v963_v45 = vsub.f32 %v2099_v35, %v2193_v42 }
 0x32d   : > { %v1693_v46 = vpop.eup %1692  ;;  %v992_v48 = vmul.f32 1.442695, %v963_v45  ;;  %v1126_v45 = vlaneseq }
 0x32e   : > { %v1034_v54 = vsel %vm690_vm6, %v1693_v46, 0.0 }
 0x32f   : > { %1694 = vpow2.f32 %v992_v48  ;;  %1035 = vadd.xlane.f32.xlu0 %v1034_v54  ;;  %v1121_v54 = vld [vmem:[%s1995_s29 + $0x58] sm:$0xff]  ;;  %s1415_s29 = scalar_lea.sflag [#allocation3], %s310_s13 }
 0x330   : > { %1165 = vperm.xlu1 %1662, %v1122_v53   ;;  %v2215_v53 = vand.u32 127, %v1126_v45 }
 0x332   : > { %v2199_v56 = vpop.xlane.xlu2 %945  ;;  %vm1176_vm7 = vcmp.eq.s32.totalorder %v2215_v53, %v2105_v38  ;;  %vm1179_vm0 = vcmp.eq.s32.totalorder %v2215_v53, %v2107_v40  ;;  %vm1178_vm8 = vcmp.eq.s32.totalorder %v2215_v53, %v2096_v33  ;;  %vm1181_vm9 = vcmp.eq.s32.totalorder %v2215_v53, %v2089_v30 }
 0x333   : > { %v964_v55 = vsub.f32 %v2110_v41, %v2199_v56  ;;  %vm1177_vm10 = vcmp.eq.s32.totalorder %v2215_v53, %v2082_v12  ;;  %vm1182_vm11 = vcmp.eq.s32.totalorder %v2215_v53, %v2134_v24  ;;  %vm1180_vm12 = vcmp.eq.s32.totalorder %v2215_v53, %v2123_v49 }
 0x334   : > { %vm1183_vm13 = vcmp.eq.s32.totalorder %v2215_v53, %v2101_v36  ;;  %vm1184_vm14 = vcmp.eq.s32.totalorder %v2215_v53, %v2114_v43  ;;  %vm1185_vm15 = vcmp.eq.s32.totalorder %v2215_v53, %v2127_v51  ;;  %vm1186_vm1 = vcmp.eq.s32.totalorder %v2215_v53, %v2141_v2 }
 0x335   : > { %v1695_v61 = vpop.eup %1694  ;;  %v994_v63 = vmul.f32 1.442695, %v964_v55 }
 0x336   : > { %v1037_v5 = vsel %vm690_vm6, %v1695_v61, 0.0 }
 0x337   : > { %1696 = vpow2.f32 %v994_v63  ;;  %1038 = vadd.xlane.f32.xlu0 %v1037_v5 }
 0x338   : > { %1171 = vperm.xlu1 %1662, %v1124_v0   ;;  %v1797_v0 = vmov 0.0  }
 0x339   : > { %v1586_v5 = vsel %vm1176_vm7, 1.0, %v1797_v0 }
 0x33a   : > { %v2205_v8 = vpop.xlane.xlu0 %948 }
 0x33b   : > { %v965_v9 = vsub.f32 %v2121_v47, %v2205_v8 }
 0x33d   : > { %v1697_v15 = vpop.eup %1696  ;;  %v996_v18 = vmul.f32 1.442695, %v965_v9 }
 0x33e   : > { %v1040_v21 = vsel %vm690_vm6, %v1697_v15, 0.0 }
 0x33f   : > { %1698 = vpow2.f32 %v996_v18  ;;  %1168 = vperm.xlu2 %1663, %v1123_v13   ;;  %1041 = vadd.xlane.f32.xlu0 %v1040_v21 }
 0x342   : > { %v1000_v29 = vpop.xlane.xlu1 %999 }
 0x343   : > { %1700 = vlog2.f32 %v1000_v29 }
 0x345   : > { %v1699_v25 = vpop.eup %1698 }
 0x346   : > { %v1043_v32 = vsel %vm690_vm6, %v1699_v25, 0.0 }
 0x347   : > { %1174 = vperm.xlu2 %1663, %v1125_v22   ;;  %1044 = vadd.xlane.f32.xlu0 %v1043_v32  ;;  %v1589_v22 = vsel %vm1179_vm0, 1.0, %v1797_v0 }
 0x349   : > { %v1701_v34 = vpop.eup %1700 }
 0x34a   : > { %v1047_v37 = vmul.f32 0.6931472, %v1701_v34  ;;  %v1003_v25 = vpop.xlane.xlu2 %1002  ;;  %v1588_v34 = vsel %vm1178_vm8, 1.0, %v1797_v0  ;;  %vm1371_vm8 = vcmask 7168  }
 0x34c   : > { %v1078_v48 = vadd.f32 %v1047_v37, %v2116_v44 }
 0x34e   : > { %v1094_v55 = vsub.f32 %v2028_v57, %v1078_v48 }
 0x350   : > { %v1224_v9 = vmul.f32 %v1586_v5, %v1094_v55 }
 0x352   : > { %v1006_v46 = vpop.xlane.xlu0 %1005  ;;  %v1240_v15 = vsel %vm690_vm6, %v1224_v9, 0.0 }
 0x353   : > { %1702 = vlog2.f32 %v1006_v46 }
 0x359   : > { %v1703_v63 = vpop.eup %1702 }
 0x35a   : > { %v1009_v61 = vpop.xlane.xlu1 %1008  ;;  %v1051_v13 = vmul.f32 0.6931472, %v1703_v63  ;;  %v1591_v63 = vsel %vm1181_vm9, 1.0, %v1797_v0 }
 0x35b   : > { %1704 = vlog2.f32 %v1009_v61  ;;  %1162 = vperm.xlu0 %1661, %v1121_v54  }
 0x35c   : > { %v1080_v21 = vadd.f32 %v1051_v13, %v2136_v58  ;;  %1706 = vlog2.f32 %v1003_v25 }
 0x35e   : > { %v1096_v29 = vsub.f32 %v2038_v62, %v1080_v21 }
 0x360   : > { %v1226_v40 = vmul.f32 %v1588_v34, %v1096_v29 }
 0x361   : > { %v1705_v44 = vpop.eup %1704 }
 0x362   : > { %v1053_v18 = vmul.f32 0.6931472, %v1705_v44  ;;  %1241 = vadd.xlane.f32.xlu1 %v1240_v15  ;;  %v1707_v46 = vpop.eup %1706 }
 0x363   : > { %v1049_v62 = vmul.f32 0.6931472, %v1707_v46  ;;  %v1593_v46 = vsel %vm1183_vm13, 1.0, %v1797_v0 }
 0x364   : > { %v1081_v57 = vadd.f32 %v1053_v18, %v2143_v3  ;;  %v1012_v3 = vpop.xlane.xlu2 %1011 }
 0x365   : > { %v1079_v9 = vadd.f32 %v1049_v62, %v2129_v52 }
 0x366   : > { %v1097_v38 = vsub.f32 %v2043_v1, %v1081_v57  ;;  %v1246_v1 = vsel %vm690_vm6, %v1226_v40, 0.0  ;;  %v1587_v57 = vsel %vm1177_vm10, 1.0, %v1797_v0 }
 0x368   : > { %v1227_v32 = vmul.f32 %v1589_v22, %v1097_v38  ;;  %v1592_v38 = vsel %vm1182_vm11, 1.0, %v1797_v0 }
 0x36a   : > { %v1015_v58 = vpop.xlane.xlu0 %1014  ;;  %v1249_v37 = vsel %vm690_vm6, %v1227_v32, 0.0 }
 0x36b   : > { %1708 = vlog2.f32 %v1015_v58  ;;  %1250 = vadd.xlane.f32.xlu1 %v1249_v37 }
 0x36c   : > { %1710 = vlog2.f32 %v1012_v3 }
 0x370   : > { %1247 = vadd.xlane.f32.xlu2 %v1246_v1 }
 0x371   : > { %v1709_v33 = vpop.eup %1708 }
 0x372   : > { %v1057_v48 = vmul.f32 0.6931472, %v1709_v33  ;;  %v1018_v54 = vpop.xlane.xlu1 %1017  ;;  %v1711_v5 = vpop.eup %1710  ;;  %v1594_v33 = vsel %vm1184_vm14, 1.0, %v1797_v0 }
 0x373   : > { %1712 = vlog2.f32 %v1018_v54 }
 0x374   : > { %v1083_v55 = vadd.f32 %v1057_v48, %v2153_v19  ;;  %v1095_v19 = vsub.f32 %v2033_v59, %v1079_v9 }
 0x376   : > { %v1099_v61 = vsub.f32 %v2053_v7, %v1083_v55  ;;  %v1055_v7 = vmul.f32 0.6931472, %v1711_v5  ;;  %v1225_v12 = vmul.f32 %v1587_v57, %v1095_v19 }
 0x378   : > { %v1229_v13 = vmul.f32 %v1591_v63, %v1099_v61  ;;  %v1082_v22 = vadd.f32 %v1055_v7, %v2148_v11  ;;  %v1595_v61 = vsel %vm1185_vm15, 1.0, %v1797_v0 }
 0x379   : > { %v1713_v44 = vpop.eup %1712 }
 0x37a   : > { %v1059_v15 = vmul.f32 0.6931472, %v1713_v44  ;;  %v1021_v18 = vpop.xlane.xlu2 %1020  ;;  %v1255_v21 = vsel %vm690_vm6, %v1229_v13, 0.0  ;;  %v1098_v24 = vsub.f32 %v2048_v4, %v1082_v22  ;;  %v1596_v44 = vsel %vm1186_vm1, 1.0, %v1797_v0 }
 0x37b   : > { %1714 = vlog2.f32 %v1021_v18  ;;  %1256 = vadd.xlane.f32.xlu2 %v1255_v21 }
 0x37c   : > { %v1084_v30 = vadd.f32 %v1059_v15, %v2158_v28  ;;  %v1590_v28 = vsel %vm1180_vm12, 1.0, %v1797_v0 }
 0x37d   : > { %v1228_v58 = vmul.f32 %v1590_v28, %v1098_v24 }
 0x37e   : > { %v1100_v52 = vsub.f32 %v2058_v10, %v1084_v30  ;;  %v1243_v10 = vsel %vm690_vm6, %v1225_v12, 0.0 }
 0x37f   : > { %v1252_v4 = vsel %vm690_vm6, %v1228_v58, 0.0 }
 0x380   : > { %v1230_v25 = vmul.f32 %v1592_v38, %v1100_v52 }
 0x381   : > { %v1715_v29 = vpop.eup %1714 }
 0x382   : > { %v1024_v32 = vpop.xlane.xlu2 %1023  ;;  %v1258_v34 = vsel %vm690_vm6, %v1230_v25, 0.0  ;;  %v1061_v59 = vmul.f32 0.6931472, %v1715_v29 }
 0x383   : > { %1716 = vlog2.f32 %v1024_v32  ;;  %1259 = vadd.xlane.f32.xlu1 %v1258_v34 }
 0x384   : > { %v1085_v11 = vadd.f32 %v1061_v59, %v2163_v39 }
 0x385   : > { %1244 = vadd.xlane.f32.xlu0 %v1243_v10 }
 0x386   : > { %v1101_v1 = vsub.f32 %v2063_v14, %v1085_v11 }
 0x388   : > { %v1231_v54 = vmul.f32 %v1593_v46, %v1101_v1 }
 0x389   : > { %v1717_v37 = vpop.eup %1716 }
 0x38a   : > { %v1063_v40 = vmul.f32 0.6931472, %v1717_v37  ;;  %v1027_v3 = vpop.xlane.xlu1 %1026 }
 0x38b   : > { %1718 = vlog2.f32 %v1027_v3 }
 0x38c   : > { %v1086_v49 = vadd.f32 %v1063_v40, %v2168_v50 }
 0x38d   : > { %1253 = vadd.xlane.f32.xlu0 %v1252_v4 }
 0x38e   : > { %v1102_v39 = vsub.f32 %v2068_v17, %v1086_v49  ;;  %v1261_v17 = vsel %vm690_vm6, %v1231_v54, 0.0 }
 0x390   : > { %v1232_v48 = vmul.f32 %v1594_v33, %v1102_v39 }
 0x391   : > { %v1719_v36 = vpop.eup %1718 }
 0x392   : > { %v1065_v62 = vmul.f32 0.6931472, %v1719_v36  ;;  %v1030_v55 = vpop.xlane.xlu0 %1029  ;;  %v1264_v43 = vsel %vm690_vm6, %v1232_v48, 0.0 }
 0x393   : > { %1720 = vlog2.f32 %v1030_v55  ;;  %1265 = vadd.xlane.f32.xlu2 %v1264_v43  ;;  %v2309_v43 = vshrl.u32 %v1126_v45, 7 }
 0x394   : > { %v1087_v14 = vadd.f32 %v1065_v62, %v2173_v60 }
 0x395   : > { %1262 = vadd.xlane.f32.xlu0 %v1261_v17  ;;  %v1309_v45 = vadd.s32 24, %v2309_v43 }
 0x396   : > { %v1103_v50 = vsub.f32 %v2073_v20, %v1087_v14  ;;  %v2313_v14 = vstv %s1602_s9 }
 0x398   : > { %v1233_v63 = vmul.f32 %v1595_v61, %v1103_v50 }
 0x399   : > { %v1721_v5 = vpop.eup %1720 }
 0x39a   : > { %v1067_v9 = vmul.f32 0.6931472, %v1721_v5  ;;  %v1267_v13 = vsel %vm690_vm6, %v1233_v63, 0.0  ;;  %v1033_v21 = vpop.xlane.xlu2 %1032 }
 0x39b   : > { %1268 = vadd.xlane.f32.xlu1 %v1267_v13  ;;  %v1310_v13 = vadd.s32 32, %v2309_v43 }
 0x39c   : > { %v1088_v51 = vadd.f32 %v1067_v9, %v2178_v6 }
 0x39e   : > { %v1104_v60 = vsub.f32 %v2078_v23, %v1088_v51 }
 0x3a0   : > { %v1234_v15 = vmul.f32 %v1596_v44, %v1104_v60 }
 0x3a2   : > { %v1270_v20 = vsel %vm690_vm6, %v1234_v15, 0.0  ;;  %v1036_v18 = vpop.xlane.xlu0 %1035  ;;  %v1166_v30 = vpop.permute.xlu1 %1165  ;;  %v1326_v15 = vadd.s32 %v2313_v14, %v1309_v45 }
 0x3a3   : > { %1271 = vadd.xlane.f32.xlu0 %v1270_v20  ;;  %1722 = vlog2.f32 %v1036_v18  ;;  %vm1188_vm2 = vcmp.eq.s32.totalorder %v2215_v53, %v1166_v30  ;;  %v1169_v22 = vpop.permute.xlu2 %1168  ;;  %v1311_v30 = vadd.s32 40, %v2309_v43 }
 0x3a4   : > { %v1598_v6 = vsel %vm1188_vm2, 1.0, %v1797_v0  ;;  %vm1189_vm4 = vcmp.eq.s32.totalorder %v2215_v53, %v1169_v22  ;;  %vm1342_vm10 = vcmp.lt.s32.totalorder %v1326_v15, 200 }
 0x3a9   : > { %v1723_v7 = vpop.eup %1722 }
 0x3aa   : > { %v1071_v19 = vmul.f32 0.6931472, %v1723_v7  ;;  %v1039_v52 = vpop.xlane.xlu0 %1038  ;;  %v1172_v48 = vpop.permute.xlu1 %1171 }
 0x3ab   : > { %1724 = vlog2.f32 %v1039_v52  ;;  %v1175_v28 = vpop.permute.xlu2 %1174  ;;  %vm1190_vm7 = vcmp.eq.s32.totalorder %v2215_v53, %v1172_v48 }
 0x3ac   : > { %v1090_v2 = vadd.f32 %v1071_v19, %v2188_v26  ;;  %v1599_v26 = vsel %vm1189_vm4, 1.0, %v1797_v0  ;;  %vm1191_vm5 = vcmp.eq.s32.totalorder %v2215_v53, %v1175_v28  ;;  %v1600_v62 = vsel %vm1190_vm7, 1.0, %v1797_v0 }
 0x3ad   : > { %v1601_v3 = vsel %vm1191_vm5, 1.0, %v1797_v0 }
 0x3ae   : > { %v1106_v23 = vsub.f32 %v2092_v31, %v1090_v2 }
 0x3b0   : > { %v1236_v57 = vmul.f32 %v1598_v6, %v1106_v23 }
 0x3b1   : > { %v1725_v38 = vpop.eup %1724 }
 0x3b2   : > { %v1073_v25 = vmul.f32 0.6931472, %v1725_v38  ;;  %v1042_v12 = vpop.xlane.xlu0 %1041  ;;  %v1276_v29 = vsel %vm690_vm6, %v1236_v57, 0.0  ;;  %v1328_v57 = vadd.s32 %v2313_v14, %v1311_v30  ;;  %v1321_v30 = vadd.s32 120, %v2309_v43 }
 0x3b3   : > { %1277 = vadd.xlane.f32.xlu1 %v1276_v29 }
 0x3b4   : > { %v1091_v32 = vadd.f32 %v1073_v25, %v2193_v42  ;;  %v1312_v25 = vadd.s32 48, %v2309_v43  ;;  %vm1344_vm12 = vcmp.lt.s32.totalorder %v1328_v57, 200 }
 0x3b6   : > { %v1107_v34 = vsub.f32 %v2099_v35, %v1091_v32 }
 0x3b8   : > { %v1237_v59 = vmul.f32 %v1599_v26, %v1107_v34 }
 0x3ba   : > { %v1045_v31 = vpop.xlane.xlu0 %1044  ;;  %v1279_v10 = vsel %vm690_vm6, %v1237_v59, 0.0 }
 0x3bb   : > { %1726 = vlog2.f32 %v1045_v31  ;;  %1280 = vadd.xlane.f32.xlu0 %v1279_v10  ;;  %v1329_v10 = vadd.s32 %v2313_v14, %v1312_v25  ;;  %v1338_v25 = vadd.s32 %v2313_v14, %v1321_v30 }
 0x3bc   : > { %1728 = vlog2.f32 %v1033_v21  ;;  %v1327_v21 = vadd.s32 %v2313_v14, %v1310_v13 }
 0x3bd   : > { %1730 = vlog2.f32 %v1042_v12  ;;  %v1313_v12 = vadd.s32 56, %v2309_v43  ;;  %vm1345_vm13 = vcmp.lt.s32.totalorder %v1329_v10, 200  ;;  %vm1354_vm7 = vcmp.lt.s32.totalorder %v1338_v25, 200 }
 0x3be   : > { %vm1343_vm11 = vcmp.lt.s32.totalorder %v1327_v21, 200 }
 0x3bf   : > { %v1330_v28 = vadd.s32 %v2313_v14, %v1313_v12 }
 0x3c1   : > { %v1727_v24 = vpop.eup %1726  ;;  %vm1346_vm14 = vcmp.lt.s32.totalorder %v1330_v28, 200 }
 0x3c2   : > { %v1729_v11 = vpop.eup %1728  ;;  %v1077_v58 = vmul.f32 0.6931472, %v1727_v24 }
 0x3c3   : > { %v1069_v37 = vmul.f32 0.6931472, %v1729_v11  ;;  %v1731_v35 = vpop.eup %1730 }
 0x3c4   : > { %v1093_v42 = vadd.f32 %v1077_v58, %v2205_v8  ;;  %v1075_v1 = vmul.f32 0.6931472, %v1731_v35 }
 0x3c5   : > { %v1089_v4 = vadd.f32 %v1069_v37, %v2183_v16  ;;  %v1315_v37 = vadd.s32 72, %v2309_v43 }
 0x3c6   : > { %v1109_v40 = vsub.f32 %v2121_v47, %v1093_v42  ;;  %v1092_v33 = vadd.f32 %v1075_v1, %v2199_v56  ;;  %v1314_v42 = vadd.s32 64, %v2309_v43 }
 0x3c7   : > { %v1105_v8 = vsub.f32 %v2085_v27, %v1089_v4  ;;  %v1307_v27 = vadd.s32 8, %v2309_v43  ;;  %v1316_v4 = vadd.s32 80, %v2309_v43 }
 0x3c8   : > { %v1239_v49 = vmul.f32 %v1601_v3, %v1109_v40  ;;  %v1108_v36 = vsub.f32 %v2110_v41, %v1092_v33  ;;  %v1323_v41 = vadd.s32 %v2313_v14, %v2309_v43  ;;  %v1331_v1 = vadd.s32 %v2313_v14, %v1314_v42 }
 0x3c9   : > { %v1324_v17 = vadd.s32 %v2313_v14, %v1307_v27  ;;  %v1332_v33 = vadd.s32 %v2313_v14, %v1315_v37 }
 0x3ca   : > { %v1285_v39 = vsel %vm690_vm6, %v1239_v49, 0.0  ;;  %v1238_v55 = vmul.f32 %v1600_v62, %v1108_v36  ;;  %vm1339_vm0 = vcmp.lt.s32.totalorder %v1323_v41, 200  ;;  %v1318_v62 = vadd.s32 96, %v2309_v43 }
 0x3cb   : > { %1286 = vadd.xlane.f32.xlu1 %v1285_v39  ;;  %vm1347_vm15 = vcmp.lt.s32.totalorder %v1331_v1, 200  ;;  %vm1348_vm1 = vcmp.lt.s32.totalorder %v1332_v33, 200 }
 0x3cc   : > { %v1282_v56 = vsel %vm690_vm6, %v1238_v55, 0.0 }
 0x3cd   : > { %v1163_v46 = vpop.permute.xlu0 %1162 }
 0x3ce   : > { %vm1187_vm3 = vcmp.eq.s32.totalorder %v2215_v53, %v1163_v46 }
 0x3cf   : > { %v1597_v47 = vsel %vm1187_vm3, 1.0, %v1797_v0  ;;  %v1308_v0 = vadd.s32 16, %v2309_v43 }
 0x3d0   : > { %v1235_v54 = vmul.f32 %v1597_v47, %v1105_v8 }
 0x3d1   : > { %v1325_v5 = vadd.s32 %v2313_v14, %v1308_v0  ;;  %v1335_v0 = vadd.s32 %v2313_v14, %v1318_v62 }
 0x3d2   : > { %v1273_v16 = vsel %vm690_vm6, %v1235_v54, 0.0  ;;  %vm1340_vm6 = vcmp.lt.s32.totalorder %v1324_v17, 200  ;;  %v1317_v17 = vadd.s32 88, %v2309_v43 }
 0x3d3   : > { %1274 = vadd.xlane.f32.xlu2 %v1273_v16  ;;  %vm1341_vm9 = vcmp.lt.s32.totalorder %v1325_v5, 200  ;;  %v1333_v16 = vadd.s32 %v2313_v14, %v1316_v4  ;;  %v1319_v5 = vadd.s32 104, %v2309_v43  ;;  %vm1351_vm4 = vcmp.lt.s32.totalorder %v1335_v0, 200 }
 0x3d4   : > { %v1334_v13 = vadd.s32 %v2313_v14, %v1317_v17 }
 0x3d5   : > { %v1242_v53 = vpop.xlane.xlu1 %1241  ;;  %vm1349_vm2 = vcmp.lt.s32.totalorder %v1333_v16, 200 }
 0x3d6   : > { %v1288_v63 = vsub.f32 0.0, %v1242_v53  ;;  %vm1350_vm5 = vcmp.lt.s32.totalorder %v1334_v13, 200 }
 0x3d8   : > { %v1355_v60 = vsel %vm1339_vm0, %v1288_v63, 0.0 }
 0x3d9   : > { %v1372_v19 = vsel %vm1371_vm8, %v1355_v60, 0.0 }
 0x3db   : > { %1283 = vadd.xlane.f32.xlu2 %v1282_v56 }
 0x3de   : > { %v1251_v20 = vpop.xlane.xlu1 %1250 }
 0x3df   : > { %v1291_v52 = vsub.f32 0.0, %v1251_v20 }
 0x3e1   : > { %v1358_v29 = vsel %vm1342_vm10, %v1291_v52, 0.0  ;;  %v1320_v52 = vadd.s32 112, %v2309_v43 }
 0x3e2   : > { %v1377_v31 = vsel %vm1371_vm8, %v1358_v29, 0.0 }
 0x3e3   : > { %v1248_v9 = vpop.xlane.xlu2 %1247 }
 0x3e4   : > { %v1290_v44 = vsub.f32 0.0, %v1248_v9 }
 0x3e6   : > { %v1357_v2 = vsel %vm1341_vm9, %v1290_v44, 0.0 }
 0x3e7   : > { %v1375_v38 = vsel %vm1371_vm8, %v1357_v2, 0.0 }
 0x3ee   : > { %v1257_v22 = vpop.xlane.xlu2 %1256 }
 0x3ef   : > { %v1293_v59 = vsub.f32 0.0, %v1257_v22 }
 0x3f1   : > { %v1360_v35 = vsel %vm1344_vm12, %v1293_v59, 0.0 }
 0x3f2   : > { %v1381_v39 = vsel %vm1371_vm8, %v1360_v35, 0.0 }
 0x3f6   : > { %v1260_v26 = vpop.xlane.xlu1 %1259 }
 0x3f7   : > { %v1294_v40 = vsub.f32 0.0, %v1260_v26 }
 0x3f8   : > { %v1245_v50 = vpop.xlane.xlu0 %1244 }
 0x3f9   : > { %v1289_v61 = vsub.f32 0.0, %v1245_v50  ;;  %v1361_v48 = vsel %vm1345_vm13, %v1294_v40, 0.0 }
 0x3fa   : > { %v1383_v27 = vsel %vm1371_vm8, %v1361_v48, 0.0 }
 0x3fb   : > { %v1356_v51 = vsel %vm1340_vm6, %v1289_v61, 0.0 }
 0x3fc   : > { %v1373_v18 = vsel %vm1371_vm8, %v1356_v51, 0.0 }
 0x3fd   : > { %v1374_v23 = vadd.f32 %v1373_v18, %v1372_v19  ;;  %v1336_v18 = vadd.s32 %v2313_v14, %v1319_v5 }
 0x3ff   : > { %v1376_v32 = vadd.f32 %v1375_v38, %v1374_v23  ;;  %vm1352_vm3 = vcmp.lt.s32.totalorder %v1336_v18, 200 }
 0x400   : > { %v1254_v7 = vpop.xlane.xlu0 %1253 }
 0x401   : > { %v1292_v6 = vsub.f32 0.0, %v1254_v7  ;;  %v1378_v58 = vadd.f32 %v1377_v31, %v1376_v32  ;;  %v1337_v32 = vadd.s32 %v2313_v14, %v1320_v52 }
 0x403   : > { %v1359_v34 = vsel %vm1343_vm11, %v1292_v6, 0.0  ;;  %vm1353_vm6 = vcmp.lt.s32.totalorder %v1337_v32, 200 }
 0x404   : > { %v1379_v24 = vsel %vm1371_vm8, %v1359_v34, 0.0 }
 0x405   : > { %v1380_v3 = vadd.f32 %v1379_v24, %v1378_v58 }
 0x406   : > { %v1266_v46 = vpop.xlane.xlu2 %1265 }
 0x407   : > { %v1382_v47 = vadd.f32 %v1381_v39, %v1380_v3  ;;  %v1296_v55 = vsub.f32 0.0, %v1266_v46 }
 0x408   : > { %v1263_v11 = vpop.xlane.xlu0 %1262 }
 0x409   : > { %v1295_v49 = vsub.f32 0.0, %v1263_v11  ;;  %v1384_v50 = vadd.f32 %v1383_v27, %v1382_v47  ;;  %v1363_v61 = vsel %vm1347_vm15, %v1296_v55, 0.0 }
 0x40a   : > { %v1387_v60 = vsel %vm1371_vm8, %v1363_v61, 0.0 }
 0x40b   : > { %v1362_v54 = vsel %vm1346_vm14, %v1295_v49, 0.0 }
 0x40c   : > { %v1385_v53 = vsel %vm1371_vm8, %v1362_v54, 0.0 }
 0x40d   : > { %v1386_v63 = vadd.f32 %v1385_v53, %v1384_v50 }
 0x40e   : > { %v1269_v8 = vpop.xlane.xlu1 %1268 }
 0x40f   : > { %v1297_v56 = vsub.f32 0.0, %v1269_v8  ;;  %v1388_v15 = vadd.f32 %v1387_v60, %v1386_v63 }
 0x411   : > { %v1364_v45 = vsel %vm1348_vm1, %v1297_v56, 0.0 }
 0x412   : > { %v1389_v44 = vsel %vm1371_vm8, %v1364_v45, 0.0 }
 0x413   : > { %v1390_v2 = vadd.f32 %v1389_v44, %v1388_v15 }
 0x416   : > { %v1272_v36 = vpop.xlane.xlu0 %1271 }
 0x417   : > { %v1298_v41 = vsub.f32 0.0, %v1272_v36 }
 0x419   : > { %v1365_v51 = vsel %vm1349_vm2, %v1298_v41, 0.0 }
 0x41a   : > { %v1391_v21 = vsel %vm1371_vm8, %v1365_v51, 0.0 }
 0x41b   : > { %v1392_v6 = vadd.f32 %v1391_v21, %v1390_v2 }
 0x426   : > { %v1278_v9 = vpop.xlane.xlu1 %1277 }
 0x427   : > { %v1300_v20 = vsub.f32 0.0, %v1278_v9 }
 0x429   : > { %v1367_v57 = vsel %vm1351_vm4, %v1300_v20, 0.0 }
 0x42a   : > { %v1395_v26 = vsel %vm1371_vm8, %v1367_v57, 0.0 }
 0x42e   : > { %v1281_v7 = vpop.xlane.xlu0 %1280 }
 0x42f   : > { %v1301_v38 = vsub.f32 0.0, %v1281_v7 }
 0x431   : > { %v1368_v59 = vsel %vm1352_vm3, %v1301_v38, 0.0 }
 0x432   : > { %v1397_v28 = vsel %vm1371_vm8, %v1368_v59, 0.0 }
 0x43e   : > { %v1287_v12 = vpop.xlane.xlu1 %1286 }
 0x43f   : > { %v1303_v31 = vsub.f32 0.0, %v1287_v12 }
 0x441   : > { %v1370_v11 = vsel %vm1354_vm7, %v1303_v31, 0.0 }
 0x442   : > { %v1401_v35 = vsel %vm1371_vm8, %v1370_v11, 0.0 }
 0x446   : > { %v1275_v19 = vpop.xlane.xlu2 %1274 }
 0x447   : > { %v1299_v23 = vsub.f32 0.0, %v1275_v19 }
 0x449   : > { %v1366_v22 = vsel %vm1350_vm5, %v1299_v23, 0.0 }
 0x44a   : > { %v1393_v29 = vsel %vm1371_vm8, %v1366_v22, 0.0 }
 0x44b   : > { %v1394_v34 = vadd.f32 %v1393_v29, %v1392_v6 }
 0x44d   : > { %v1396_v43 = vadd.f32 %v1395_v26, %v1394_v34 }
 0x44e   : > { %v1284_v10 = vpop.xlane.xlu2 %1283 }
 0x44f   : > { %v1302_v24 = vsub.f32 0.0, %v1284_v10  ;;  %v1398_v42 = vadd.f32 %v1397_v28, %v1396_v43 }
 0x451   : > { %v1369_v58 = vsel %vm1353_vm6, %v1302_v24, 0.0 }
 0x452   : > { %v1399_v37 = vsel %vm1371_vm8, %v1369_v58, 0.0 }
 0x453   : > { %v1400_v14 = vadd.f32 %v1399_v37, %v1398_v42 }
 0x455   : > { %v1402_v40 = vadd.f32 %v1401_v35, %v1400_v14 }
 0x457   : > { %1403 = vadd.xlane.f32.xlu0 %v1402_v40 }
 0x4ca   : > { %v1404_v3 = vpop.xlane.xlu0 %1403 }
 0x4cb   : > { %v1405_v49 = vrot.slane %v1404_v3, 4 }
 0x4cd   : > { %v1406_v4 = vadd.f32 %v1405_v49, %v1404_v3 }
 0x4cf   : > { %v1407_v1 = vrot.slane %v1406_v4, 2 }
 0x4d1   : > { %v1408_v39 = vadd.f32 %v1407_v1, %v1406_v4 }
 0x4d3   : > { %v1409_v46 = vrot.slane %v1408_v39, 1 }
 0x4d5   : > { %v1410_v33 = vadd.f32 %v1409_v46, %v1408_v39 }
 0x4d7   : > { %1618 = vpush %v1410_v33 }
 0x508   : > { %s1619_s23 = spop %1618 }
 0x509   : > { %v1412_v8 = vstv %s1619_s23 }
 0x50a   : > { %1413 = vst [vmem:[%s312_s20] sm:$0xff] %v1412_v8 }
 0x50b   : > { %1759 = shalt.err (!%p1756_p3)
}
 0x50c   : > { %1620 = dma.vmem_to_hbm [thread:$0]  (%p1876_p5), %s1428_s21, 128, %s1430_s22, %s1415_s29  }
 0x50d PF: > { %p1626_p4 = scmp.ge.s32.totalorder %s1794_s27, 2  ;;  %s1441_s13 = sand.u32 1, %s1782_s24  }
 0x50e   : > { %s1442_s18 = scalar_lea.sflag [#allocation3], %s1441_s13 }
 0x50f   : > { %p1623_p7 = pnand %p1626_p4, %p1880_p6 }
 0x511   : > { %p1624_p8 = pneg %p1623_p7 }
 0x513   : > { %1777 = dma.done.wait (%p1624_p8), %s1442_s18, 128  }
 0x514   : > { %1779 = vsyncadd (%p1624_p8), %s1442_s18, 4294967168  ;;  %p17_p9 = scmp.ge.s32.totalorder %s1863_s30, 4   ;;  %s2404_s24 = smov %s1786_s25 }
 0x515   : > { %s2405_s25 = smov %s1790_s26  ;;  %s2406_s26 = smov %s1874_s10 }
 0x516   : > { %s2407_s27 = smov %s1863_s30  ;;  %19 = sbr.rel (!%p17_p9) target bundleno = 3 (0x3), region = 86 }
 0x51b   :  { %1448 = vsyncpa [#allocation3], 1 }
 0x51c   :  { %1450 = vsyncpa [#allocation3 + $0x1], 1 }

</bundles_post_ra>
